<compile_context>
chip_gen: v7x
topology: tpu7x:2x2x1
jax: 0.10.0
libtpu: 0.0.40
codegen_flags: <defaults>
</compile_context>

<pallas_src>
import functools

import jax
import jax.numpy as jnp
from jax.experimental import pallas as pl
from jax.experimental.pallas import tpu as pltpu


def _dw_pw_kernel(x_ref, wdw_ref, b1_ref, wpw_ref, b2_ref, o_ref, *, H, W, Cin):
    """Fused depthwise-3x3 + BN + ReLU + pointwise-1x1 + BN + ReLU.

    One grid step processes BT images in packed (BT*H, W*Cin) layout.
      x_ref   : (M, W*Cin)        M = BT*H packed input rows (f32)
      wdw_ref : (9, W*Cin)        depthwise weights * BN1 scale, tiled over W
      b1_ref  : (1, W*Cin)        BN1 shift, tiled over W
      wpw_ref : (W*Cin, W*Cout)   block-diag pointwise weights * BN2 scale (bf16)
      b2_ref  : (1, W*Cout)       BN2 shift, tiled over W
      o_ref   : (M, W*Cout)       packed output rows
    """
    M, LC = x_ref.shape
    x = x_ref[...]

    # Edge-validity masks (iota + compare once per step; image boundaries in
    # both h and w are handled by masking the lanes/rows that pltpu.roll wraps).
    row = jax.lax.broadcasted_iota(jnp.int32, (M, LC), 0)
    lane = jax.lax.broadcasted_iota(jnp.int32, (M, LC), 1)
    h_in_img = row % H                       # BT*H rows -> per-image row index
    not_top = h_in_img > 0                   # valid when reading row h-1
    not_bot = h_in_img < H - 1               # valid when reading row h+1
    not_left = lane >= Cin                   # valid when reading col w-1
    not_right = lane < (W - 1) * Cin         # valid when reading col w+1

    # Depthwise 3x3 (+ folded BN1 scale): 9 unrolled lane-dense VPU MACs.
    # Accumulate in f32 (portable to v5e, which has no bf16 VALU).
    acc = jnp.zeros((M, LC), jnp.float32)
    for kh in range(3):
        dh = kh - 1
        for kw in range(3):
            dw = kw - 1
            p = x
            if dh != 0:
                p = pltpu.roll(p, shift=(-dh) % M, axis=0)       # sublane XLU
            if dw != 0:
                p = pltpu.roll(p, shift=(-dw * Cin) % LC, axis=1)  # lane XLU
            mask = None
            if dh == -1:
                mask = not_top
            elif dh == 1:
                mask = not_bot
            if dw == -1:
                mask = not_left if mask is None else jnp.logical_and(mask, not_left)
            elif dw == 1:
                mask = not_right if mask is None else jnp.logical_and(mask, not_right)
            if mask is not None:
                p = jnp.where(mask, p, 0.0)
            acc = acc + p * wdw_ref[pl.ds(kh * 3 + kw, 1), :]

    # BN1 shift + ReLU (scale already folded into the depthwise weights).
    y1 = jnp.maximum(acc + b1_ref[...], 0.0)

    # Pointwise 1x1 conv (+ folded BN2 scale) as ONE lane-dense MXU matmul:
    # (M, W*Cin) @ (W*Cin, W*Cout), bf16 operands, f32 accumulate.
    y2 = jnp.dot(y1.astype(jnp.bfloat16), wpw_ref[...],
                 preferred_element_type=jnp.float32)
    y2 = jnp.maximum(y2 + b2_ref[...], 0.0)

    # Lane-dense store (last dim W*Cout, multiple of 128 at demo shapes).
    o_ref[...] = y2.astype(o_ref.dtype)


def dw_pw_conv(x_nchw, wdw, wpw, bn1, bn2, *, stride=1, eps=1e-5, btile=None):
    """x_nchw: (B, Cin, H, W) float32. Returns (B, Cout, H, W)."""
    if stride != 1:
        # TODO(synk): stride>1 needs parity-plane decimation of the packed
        # layout; only the stride=1 MobileNet blocks are implemented here.
        raise NotImplementedError("Pallas DWConvPWConv kernel supports stride=1 only")

    B, Cin, H, W = x_nchw.shape
    Cout = wpw.shape[1]
    LC, LO = W * Cin, W * Cout

    # ---- fold BatchNorm (eval mode, running stats) into weights + shifts ----
    g1, be1, m1, v1 = bn1
    s1 = g1 / jnp.sqrt(v1 + eps)
    sh1 = be1 - m1 * s1
    g2, be2, m2, v2 = bn2
    s2 = g2 / jnp.sqrt(v2 + eps)
    sh2 = be2 - m2 * s2

    # Depthwise weights * BN1 scale, tiled across W -> (9, W*Cin).
    wdw_packed = jnp.tile((wdw * s1[None, None, :]).reshape(3, 3, 1, Cin),
                          (1, 1, W, 1)).reshape(9, LC).astype(jnp.float32)
    b1_packed = jnp.tile(sh1.reshape(1, Cin), (1, W)).astype(jnp.float32)

    # Pointwise weights * BN2 scale as a block-diagonal (W*Cin, W*Cout) bf16
    # matrix so the 1x1 conv is a single lane-dense MXU matmul.
    w_big = jnp.einsum("wv,co->wcvo", jnp.eye(W, dtype=jnp.float32),
                       wpw * s2[None, :]).reshape(LC, LO).astype(jnp.bfloat16)
    b2_packed = jnp.tile(sh2.reshape(1, Cout), (1, W)).astype(jnp.float32)

    # Batch tile: largest divisor of B with M = btile*H <= 128 (fills the v5e
    # MXU; pass btile explicitly so M is a 256-multiple on v6e/v7x, re-deriving
    # for v7x's 64 MiB VMEM and keeping the resulting grid even for its 2 TCs).
    if btile is None:
        btile = 1
        for d in range(1, B + 1):
            if B % d == 0 and d * H <= 128:
                btile = d
    if (btile * H) % 8 != 0:
        btile = B  # full-array block is always a legal block shape
    M = btile * H
    grid = (B // btile,)

    # NCHW -> row-flattened packed (B*H, W*Cin); wrapper owns all layout glue.
    x_rows = jnp.transpose(x_nchw, (0, 2, 3, 1)).reshape(B * H, LC)

    kernel = functools.partial(_dw_pw_kernel, H=H, W=W, Cin=Cin)

    out_rows = pl.pallas_call(
        kernel,
        out_shape=jax.ShapeDtypeStruct((B * H, LO), x_nchw.dtype),
        grid=grid,
        in_specs=[
            pl.BlockSpec((M, LC), lambda i: (i, 0)),   # BT images of rows/step
            pl.BlockSpec((9, LC), lambda i: (0, 0)),   # dw weights (resident)
            pl.BlockSpec((1, LC), lambda i: (0, 0)),   # BN1 shift
            pl.BlockSpec((LC, LO), lambda i: (0, 0)),  # block-diag pw (bf16)
            pl.BlockSpec((1, LO), lambda i: (0, 0)),   # BN2 shift
        ],
        out_specs=pl.BlockSpec((M, LO), lambda i: (i, 0)),
        compiler_params=pltpu.CompilerParams(
            dimension_semantics=("parallel",),  # batched grid steps -> megacore
            # 32 MiB keeps headroom on v7x (64 MiB physical VMEM); raise to
            # 64-96 MiB on v6e if btile is pushed to M=256+.
            vmem_limit_bytes=32 * 1024 * 1024),
    )(x_rows, wdw_packed, b1_packed, w_big, b2_packed)

    # Packed (B*H, W*Cout) -> NCHW (wrapper-side layout work).
    return jnp.transpose(out_rows.reshape(B, H, W, Cout), (0, 3, 1, 2))


def _reference(x, wdw, wpw, bn1, bn2, *, stride=1, eps=1e-5):
    """Pure-JAX NCHW reference matching the PyTorch module (eval mode)."""
    B, Cin, H, W = x.shape
    wdw_oihw = jnp.transpose(wdw, (2, 0, 1))[:, None, :, :]       # (Cin,1,3,3)
    y = jax.lax.conv_general_dilated(
        x, wdw_oihw, (stride, stride), ((1, 1), (1, 1)),
        feature_group_count=Cin,
        dimension_numbers=("NCHW", "OIHW", "NCHW"))
    g1, b1, m1, v1 = bn1
    y = (y - m1[None, :, None, None]) / jnp.sqrt(v1 + eps)[None, :, None, None]
    y = y * g1[None, :, None, None] + b1[None, :, None, None]
    y = jnp.maximum(y, 0.0)

    wpw_oihw = jnp.transpose(wpw, (1, 0))[:, :, None, None]        # (Cout,Cin,1,1)
    y = jax.lax.conv_general_dilated(
        y, wpw_oihw, (1, 1), ((0, 0), (0, 0)),
        dimension_numbers=("NCHW", "OIHW", "NCHW"))
    g2, b2, m2, v2 = bn2
    y = (y - m2[None, :, None, None]) / jnp.sqrt(v2 + eps)[None, :, None, None]
    y = y * g2[None, :, None, None] + b2[None, :, None, None]
    return jnp.maximum(y, 0.0)


if __name__ == "__main__":
    # Small but MXU-meaningful shapes: W*Cin = 128 lanes, btile=8 -> M = 128
    # rows per matmul, grid = (2,) so both v7x TensorCores get a step.
    B, Cin, Cout, H, W = 16, 8, 16, 16, 16
    stride = 1

    key = jax.random.PRNGKey(0)
    keys = jax.random.split(key, 9)

    x = jax.random.normal(keys[0], (B, Cin, H, W), jnp.float32)

    # Depthwise weights stored (3, 3, Cin); pointwise stored (Cin, Cout).
    wdw = jax.random.normal(keys[1], (3, 3, Cin), jnp.float32) * 0.2
    wpw = jax.random.normal(keys[2], (Cin, Cout), jnp.float32) * 0.2

    # Deterministic BatchNorm parameters (gamma, beta, running_mean, running_var).
    bn1 = (jax.random.uniform(keys[3], (Cin,), jnp.float32, 0.5, 1.5),
           jax.random.normal(keys[4], (Cin,), jnp.float32) * 0.1,
           jax.random.normal(keys[5], (Cin,), jnp.float32) * 0.1,
           jax.random.uniform(keys[6], (Cin,), jnp.float32, 0.5, 1.5))
    bn2 = (jax.random.uniform(keys[7], (Cout,), jnp.float32, 0.5, 1.5),
           jax.random.normal(keys[8], (Cout,), jnp.float32) * 0.1,
           jnp.zeros((Cout,), jnp.float32),
           jnp.ones((Cout,), jnp.float32))

    out = dw_pw_conv(x, wdw, wpw, bn1, bn2, stride=stride)
    out = jax.block_until_ready(out)

    ref = _reference(x, wdw, wpw, bn1, bn2, stride=stride)
    assert out.shape == ref.shape, (out.shape, ref.shape)
    # bf16 MXU operands (f32 accumulate, effective depth Cin=8) on the pointwise
    # matmul -> tolerance tightened vs the previous 5e-2 per review.
    assert jnp.allclose(out, ref, atol=2e-2, rtol=1e-2), \
        float(jnp.max(jnp.abs(out - ref)))

    print("KERNEL_OK")
</pallas_src>

<mosaic_0001>
module attributes {stable_mosaic.version = 11 : i64} {
  func.func @_dw_pw_kernel(%arg0: i32, %arg1: memref<128x128xf32, #tpu.memory_space<vmem>>, %arg2: memref<9x128xf32, #tpu.memory_space<vmem>>, %arg3: memref<1x128xf32, #tpu.memory_space<vmem>>, %arg4: memref<128x256xbf16, #tpu.memory_space<vmem>>, %arg5: memref<1x256xf32, #tpu.memory_space<vmem>>, %arg6: memref<128x256xf32, #tpu.memory_space<vmem>>) attributes {dimension_semantics = [#tpu.dimension_semantics<parallel>], iteration_bounds = array<i64: 2>, scalar_prefetch = 0 : i64, scratch_operands = 0 : i64, tpu.core_type = #tpu.core_type<tc>, window_params = [{transform_indices = @transform_0, window_bounds = array<i64: 128, 128>}, {pipeline_mode = #tpu.pipeline_mode<synchronous>, transform_indices = @transform_1, window_bounds = array<i64: 9, 128>}, {pipeline_mode = #tpu.pipeline_mode<synchronous>, transform_indices = @transform_2, window_bounds = array<i64: 1, 128>}, {pipeline_mode = #tpu.pipeline_mode<synchronous>, transform_indices = @transform_3, window_bounds = array<i64: 128, 256>}, {pipeline_mode = #tpu.pipeline_mode<synchronous>, transform_indices = @transform_4, window_bounds = array<i64: 1, 256>}, {transform_indices = @transform_5, window_bounds = array<i64: 128, 256>}]} {
    %c0 = arith.constant 0 : index
    %c0_0 = arith.constant 0 : index
    %0 = vector.load %arg1[%c0, %c0_0] : memref<128x128xf32, #tpu.memory_space<vmem>>, vector<128x128xf32>
    %1 = tpu.iota {dimensions = array<i32: 0>} : vector<128x128xi32>
    %2 = tpu.iota {dimensions = array<i32: 1>} : vector<128x128xi32>
    %c16_i32 = arith.constant 16 : i32
    %c0_i32 = arith.constant 0 : i32
    %3 = arith.cmpi eq, %c16_i32, %c0_i32 : i32
    %c1_i32 = arith.constant 1 : i32
    %4 = arith.select %3, %c1_i32, %c16_i32 : i32
    %5 = vector.broadcast %4 : i32 to vector<128x128xi32>
    %6 = arith.remsi %1, %5 : vector<128x128xi32>
    %c0_i32_1 = arith.constant 0 : i32
    %7 = vector.broadcast %c0_i32_1 : i32 to vector<128x128xi32>
    %8 = arith.cmpi ne, %6, %7 : vector<128x128xi32>
    %c0_i32_2 = arith.constant 0 : i32
    %9 = vector.broadcast %c0_i32_2 : i32 to vector<128x128xi32>
    %10 = arith.cmpi slt, %6, %9 : vector<128x128xi32>
    %c0_i32_3 = arith.constant 0 : i32
    %11 = arith.cmpi slt, %4, %c0_i32_3 : i32
    %12 = vector.broadcast %11 : i1 to vector<128x128xi1>
    %13 = vector.broadcast %12 : vector<128x128xi1> to vector<128x128xi1>
    %14 = arith.xori %10, %13 : vector<128x128xi1>
    %15 = arith.andi %14, %8 : vector<128x128xi1>
    %16 = vector.broadcast %4 : i32 to vector<128x128xi32>
    %17 = arith.addi %6, %16 : vector<128x128xi32>
    %18 = arith.select %15, %17, %6 : vector<128x128xi1>, vector<128x128xi32>
    %c0_i32_4 = arith.constant 0 : i32
    %19 = vector.broadcast %c0_i32_4 : i32 to vector<128x128xi32>
    %20 = arith.cmpi sgt, %18, %19 : vector<128x128xi32>
    %c15_i32 = arith.constant 15 : i32
    %21 = vector.broadcast %c15_i32 : i32 to vector<128x128xi32>
    %22 = arith.cmpi slt, %18, %21 : vector<128x128xi32>
    %c8_i32 = arith.constant 8 : i32
    %23 = vector.broadcast %c8_i32 : i32 to vector<128x128xi32>
    %24 = arith.cmpi sge, %2, %23 : vector<128x128xi32>
    %c120_i32 = arith.constant 120 : i32
    %25 = vector.broadcast %c120_i32 : i32 to vector<128x128xi32>
    %26 = arith.cmpi slt, %2, %25 : vector<128x128xi32>
    %cst = arith.constant 0.000000e+00 : f32
    %27 = vector.broadcast %cst : f32 to vector<128x128xf32>
    %c1_i32_5 = arith.constant 1 : i32
    %28 = tpu.dynamic_rotate %0 by %c1_i32_5 dim 0 : vector<128x128xf32>, i32 -> vector<128x128xf32>
    %c8_i32_6 = arith.constant 8 : i32
    %29 = tpu.dynamic_rotate %28 by %c8_i32_6 dim 1 : vector<128x128xf32>, i32 -> vector<128x128xf32>
    %30 = arith.andi %20, %24 : vector<128x128xi1>
    %cst_7 = arith.constant 0.000000e+00 : f32
    %31 = vector.broadcast %cst_7 : f32 to vector<128x128xf32>
    %32 = arith.select %30, %29, %31 : vector<128x128xi1>, vector<128x128xf32>
    %c0_8 = arith.constant 0 : index
    %c0_9 = arith.constant 0 : index
    %33 = vector.load %arg2[%c0_8, %c0_9] : memref<9x128xf32, #tpu.memory_space<vmem>>, vector<1x128xf32>
    %34 = vector.broadcast %33 : vector<1x128xf32> to vector<128x128xf32>
    %35 = arith.mulf %32, %34 : vector<128x128xf32>
    %36 = arith.addf %27, %35 : vector<128x128xf32>
    %c1_i32_10 = arith.constant 1 : i32
    %37 = tpu.dynamic_rotate %0 by %c1_i32_10 dim 0 : vector<128x128xf32>, i32 -> vector<128x128xf32>
    %cst_11 = arith.constant 0.000000e+00 : f32
    %38 = vector.broadcast %cst_11 : f32 to vector<128x128xf32>
    %39 = arith.select %20, %37, %38 : vector<128x128xi1>, vector<128x128xf32>
    %c1 = arith.constant 1 : index
    %c0_12 = arith.constant 0 : index
    %40 = vector.load %arg2[%c1, %c0_12] : memref<9x128xf32, #tpu.memory_space<vmem>>, vector<1x128xf32>
    %41 = vector.broadcast %40 : vector<1x128xf32> to vector<128x128xf32>
    %42 = arith.mulf %39, %41 : vector<128x128xf32>
    %43 = arith.addf %36, %42 : vector<128x128xf32>
    %c1_i32_13 = arith.constant 1 : i32
    %44 = tpu.dynamic_rotate %0 by %c1_i32_13 dim 0 : vector<128x128xf32>, i32 -> vector<128x128xf32>
    %c120_i32_14 = arith.constant 120 : i32
    %45 = tpu.dynamic_rotate %44 by %c120_i32_14 dim 1 : vector<128x128xf32>, i32 -> vector<128x128xf32>
    %46 = arith.andi %20, %26 : vector<128x128xi1>
    %cst_15 = arith.constant 0.000000e+00 : f32
    %47 = vector.broadcast %cst_15 : f32 to vector<128x128xf32>
    %48 = arith.select %46, %45, %47 : vector<128x128xi1>, vector<128x128xf32>
    %c2 = arith.constant 2 : index
    %c0_16 = arith.constant 0 : index
    %49 = vector.load %arg2[%c2, %c0_16] : memref<9x128xf32, #tpu.memory_space<vmem>>, vector<1x128xf32>
    %50 = vector.broadcast %49 : vector<1x128xf32> to vector<128x128xf32>
    %51 = arith.mulf %48, %50 : vector<128x128xf32>
    %52 = arith.addf %43, %51 : vector<128x128xf32>
    %c8_i32_17 = arith.constant 8 : i32
    %53 = tpu.dynamic_rotate %0 by %c8_i32_17 dim 1 : vector<128x128xf32>, i32 -> vector<128x128xf32>
    %cst_18 = arith.constant 0.000000e+00 : f32
    %54 = vector.broadcast %cst_18 : f32 to vector<128x128xf32>
    %55 = arith.select %24, %53, %54 : vector<128x128xi1>, vector<128x128xf32>
    %c3 = arith.constant 3 : index
    %c0_19 = arith.constant 0 : index
    %56 = vector.load %arg2[%c3, %c0_19] : memref<9x128xf32, #tpu.memory_space<vmem>>, vector<1x128xf32>
    %57 = vector.broadcast %56 : vector<1x128xf32> to vector<128x128xf32>
    %58 = arith.mulf %55, %57 : vector<128x128xf32>
    %59 = arith.addf %52, %58 : vector<128x128xf32>
    %c4 = arith.constant 4 : index
    %c0_20 = arith.constant 0 : index
    %60 = vector.load %arg2[%c4, %c0_20] : memref<9x128xf32, #tpu.memory_space<vmem>>, vector<1x128xf32>
    %61 = vector.broadcast %60 : vector<1x128xf32> to vector<128x128xf32>
    %62 = arith.mulf %0, %61 : vector<128x128xf32>
    %63 = arith.addf %59, %62 : vector<128x128xf32>
    %c120_i32_21 = arith.constant 120 : i32
    %64 = tpu.dynamic_rotate %0 by %c120_i32_21 dim 1 : vector<128x128xf32>, i32 -> vector<128x128xf32>
    %cst_22 = arith.constant 0.000000e+00 : f32
    %65 = vector.broadcast %cst_22 : f32 to vector<128x128xf32>
    %66 = arith.select %26, %64, %65 : vector<128x128xi1>, vector<128x128xf32>
    %c5 = arith.constant 5 : index
    %c0_23 = arith.constant 0 : index
    %67 = vector.load %arg2[%c5, %c0_23] : memref<9x128xf32, #tpu.memory_space<vmem>>, vector<1x128xf32>
    %68 = vector.broadcast %67 : vector<1x128xf32> to vector<128x128xf32>
    %69 = arith.mulf %66, %68 : vector<128x128xf32>
    %70 = arith.addf %63, %69 : vector<128x128xf32>
    %c127_i32 = arith.constant 127 : i32
    %71 = tpu.dynamic_rotate %0 by %c127_i32 dim 0 : vector<128x128xf32>, i32 -> vector<128x128xf32>
    %c8_i32_24 = arith.constant 8 : i32
    %72 = tpu.dynamic_rotate %71 by %c8_i32_24 dim 1 : vector<128x128xf32>, i32 -> vector<128x128xf32>
    %73 = arith.andi %22, %24 : vector<128x128xi1>
    %cst_25 = arith.constant 0.000000e+00 : f32
    %74 = vector.broadcast %cst_25 : f32 to vector<128x128xf32>
    %75 = arith.select %73, %72, %74 : vector<128x128xi1>, vector<128x128xf32>
    %c6 = arith.constant 6 : index
    %c0_26 = arith.constant 0 : index
    %76 = vector.load %arg2[%c6, %c0_26] : memref<9x128xf32, #tpu.memory_space<vmem>>, vector<1x128xf32>
    %77 = vector.broadcast %76 : vector<1x128xf32> to vector<128x128xf32>
    %78 = arith.mulf %75, %77 : vector<128x128xf32>
    %79 = arith.addf %70, %78 : vector<128x128xf32>
    %c127_i32_27 = arith.constant 127 : i32
    %80 = tpu.dynamic_rotate %0 by %c127_i32_27 dim 0 : vector<128x128xf32>, i32 -> vector<128x128xf32>
    %cst_28 = arith.constant 0.000000e+00 : f32
    %81 = vector.broadcast %cst_28 : f32 to vector<128x128xf32>
    %82 = arith.select %22, %80, %81 : vector<128x128xi1>, vector<128x128xf32>
    %c7 = arith.constant 7 : index
    %c0_29 = arith.constant 0 : index
    %83 = vector.load %arg2[%c7, %c0_29] : memref<9x128xf32, #tpu.memory_space<vmem>>, vector<1x128xf32>
    %84 = vector.broadcast %83 : vector<1x128xf32> to vector<128x128xf32>
    %85 = arith.mulf %82, %84 : vector<128x128xf32>
    %86 = arith.addf %79, %85 : vector<128x128xf32>
    %c127_i32_30 = arith.constant 127 : i32
    %87 = tpu.dynamic_rotate %0 by %c127_i32_30 dim 0 : vector<128x128xf32>, i32 -> vector<128x128xf32>
    %c120_i32_31 = arith.constant 120 : i32
    %88 = tpu.dynamic_rotate %87 by %c120_i32_31 dim 1 : vector<128x128xf32>, i32 -> vector<128x128xf32>
    %89 = arith.andi %22, %26 : vector<128x128xi1>
    %cst_32 = arith.constant 0.000000e+00 : f32
    %90 = vector.broadcast %cst_32 : f32 to vector<128x128xf32>
    %91 = arith.select %89, %88, %90 : vector<128x128xi1>, vector<128x128xf32>
    %c8 = arith.constant 8 : index
    %c0_33 = arith.constant 0 : index
    %92 = vector.load %arg2[%c8, %c0_33] : memref<9x128xf32, #tpu.memory_space<vmem>>, vector<1x128xf32>
    %93 = vector.broadcast %92 : vector<1x128xf32> to vector<128x128xf32>
    %94 = arith.mulf %91, %93 : vector<128x128xf32>
    %95 = arith.addf %86, %94 : vector<128x128xf32>
    %c0_34 = arith.constant 0 : index
    %c0_35 = arith.constant 0 : index
    %96 = vector.load %arg3[%c0_34, %c0_35] : memref<1x128xf32, #tpu.memory_space<vmem>>, vector<1x128xf32>
    %97 = vector.broadcast %96 : vector<1x128xf32> to vector<128x128xf32>
    %98 = arith.addf %95, %97 : vector<128x128xf32>
    %cst_36 = arith.constant 0.000000e+00 : f32
    %99 = vector.broadcast %cst_36 : f32 to vector<128x128xf32>
    %100 = arith.maximumf %98, %99 : vector<128x128xf32>
    %101 = arith.truncf %100 : vector<128x128xf32> to vector<128x128xbf16>
    %c0_37 = arith.constant 0 : index
    %c0_38 = arith.constant 0 : index
    %102 = vector.load %arg4[%c0_37, %c0_38] : memref<128x256xbf16, #tpu.memory_space<vmem>>, vector<128x256xbf16>
    %cst_39 = arith.constant dense<0.000000e+00> : vector<128x256xf32>
    %103 = tpu.matmul %101, %102, %cst_39 {dimension_numbers = #tpu.dot_dimension_numbers<[1], [0], [0], [1], [0, 0, 1, 1], [], []>} : vector<128x128xbf16>, vector<128x256xbf16>, vector<128x256xf32> -> vector<128x256xf32>
    %c0_40 = arith.constant 0 : index
    %c0_41 = arith.constant 0 : index
    %104 = vector.load %arg5[%c0_40, %c0_41] : memref<1x256xf32, #tpu.memory_space<vmem>>, vector<1x256xf32>
    %105 = vector.broadcast %104 : vector<1x256xf32> to vector<128x256xf32>
    %106 = arith.addf %103, %105 : vector<128x256xf32>
    %cst_42 = arith.constant 0.000000e+00 : f32
    %107 = vector.broadcast %cst_42 : f32 to vector<128x256xf32>
    %108 = arith.maximumf %106, %107 : vector<128x256xf32>
    %c0_43 = arith.constant 0 : index
    %c0_44 = arith.constant 0 : index
    %109 = vector.load %arg6[%c0_43, %c0_44] : memref<128x256xf32, #tpu.memory_space<vmem>>, vector<128x256xf32>
    tpu.vector_store %arg6[%c0_43, %c0_44], %108 {strides = array<i32>} : memref<128x256xf32, #tpu.memory_space<vmem>>, vector<128x256xf32>,
    return
  }
  func.func @transform_0(%arg0: i32) -> (i32, i32) {
    %c0_i32 = arith.constant 0 : i32
    %c0_i32_0 = arith.constant 0 : i32
    return %arg0, %c0_i32 : i32, i32
  }
  func.func @transform_1(%arg0: i32) -> (i32, i32) {
    %c0_i32 = arith.constant 0 : i32
    %c0_i32_0 = arith.constant 0 : i32
    %c0_i32_1 = arith.constant 0 : i32
    return %c0_i32, %c0_i32_0 : i32, i32
  }
  func.func @transform_2(%arg0: i32) -> (i32, i32) {
    %c0_i32 = arith.constant 0 : i32
    %c0_i32_0 = arith.constant 0 : i32
    %c0_i32_1 = arith.constant 0 : i32
    return %c0_i32, %c0_i32_0 : i32, i32
  }
  func.func @transform_3(%arg0: i32) -> (i32, i32) {
    %c0_i32 = arith.constant 0 : i32
    %c0_i32_0 = arith.constant 0 : i32
    %c0_i32_1 = arith.constant 0 : i32
    return %c0_i32, %c0_i32_0 : i32, i32
  }
  func.func @transform_4(%arg0: i32) -> (i32, i32) {
    %c0_i32 = arith.constant 0 : i32
    %c0_i32_0 = arith.constant 0 : i32
    %c0_i32_1 = arith.constant 0 : i32
    return %c0_i32, %c0_i32_0 : i32, i32
  }
  func.func @transform_5(%arg0: i32) -> (i32, i32) {
    %c0_i32 = arith.constant 0 : i32
    %c0_i32_0 = arith.constant 0 : i32
    return %arg0, %c0_i32 : i32, i32
  }
}

</mosaic_0001>

<bundles_post_ra>
// kernel: tpu_custom_call.1
= control target key start
LH: loop header
LB: loop body
LE: loop exit
PB: predicated region body
PF: predicated region fallthrough
CT: control target
= control target key end

     0   :  { %10 = vsyncpa [#allocation3], 0  ;;  %s3775_s0 = inlined_call_operand.hbm [shape: f32[256,128], index: 0, kind: input, shape index: {}]   ;;  %s3776_s1 = inlined_call_operand.hbm [shape: f32[9,128], index: 1, kind: input, shape index: {}]   ;;  %s3777_s2 = inlined_call_operand.vmem [shape: f32[1,128], index: 2, kind: input, shape index: {}]   ;;  %s3778_s3 = inlined_call_operand.hbm [shape: bf16[128,256], index: 3, kind: input, shape index: {}]   ;;  %s3779_s4 = inlined_call_operand.vmem [shape: f32[1,256], index: 4, kind: input, shape index: {}]   ;;  %s3780_s5 = inlined_call_operand.hbm [shape: f32[256,256], index: 5, kind: output, shape index: {}]  }
   0x1   :  { %12 = vsyncpa [#allocation3 + $0x1], 0 }
   0x2   :  { %13 = vsyncpa [#allocation6], 0 }
   0x3   :  { %14 = vsyncpa [#allocation4], 0 }
   0x4   :  { %16 = vsyncpa [#allocation4 + $0x1], 0  ;;  %s2129_s18 = smov 0   ;;  %s2131_s19 = smov 0  }
   0x5   :  { %s2133_s20 = smov 0   ;;  %s2135_s21 = smov 0  }
   0x6 LB: > { %s2150_s22 = sadd.s32 4294967295, %s2086_s21   ;;  %s1758_s23 = sadd.s32 4294967294, %s2086_s21   ;;  %s2086_s21 = sphi %s2135_s21, %s3921_s21   ;;  %s2082_s20 = sphi %s2133_s20, %s3920_s20   ;;  %s2078_s19 = sphi %s2131_s19, %s3919_s19   ;;  %s2074_s18 = sphi %s2129_s18, %s3918_s18  }
   0x7   : > { %p42_p0 = scmp.ne.s32.totalorder %s2078_s19, %s2074_s18  ;;  %p3781_p1 = scmp.eq.s32.totalorder %s2150_s22, 0 }
   0x8   : > { %p156_p3 = scmp.eq.s32.totalorder %s1758_s23, 1  ;;  %p1759_p5 = scmp.ge.s32.totalorder %s2086_s21, 1 }
   0x9   : > { %p2159_p4 = por %p3781_p1, %p42_p0  ;;  %p163_p7 = scmp.lt.s32.totalorder %s2086_s21, 3 }
   0xa   : > { %p2164_p6 = por %p156_p3, %p42_p0  ;;  %s2088_s27 = smov [#allocation5]  }
   0xb   : > { %s3804_s24 = scalar_select %p2159_p4, 1, 0 }
   0xc   : > { %s3805_s25 = scalar_select %p2164_p6, 1, 0 }
   0xd   : > { %p2169_p8 = pnand %p1759_p5, %p163_p7  ;;  %s175_s28 = sshll.u32 %s2088_s27, 4  ;;  %s2173_s28 = int_to_ptr.vmem [resolvable:$true] %s175_s28 }
   0xe   : > { %s2089_s30 = smov [#allocation7]   ;;  %s1930_s9 = scalar_lea.hbm %s3776_s1, 256 }
   0xf   : > { %p1834_p9 = pneg %p2169_p8  ;;  %s191_s6 = sshll.u32 %s2089_s30, 4  ;;  %s2184_s6 = int_to_ptr.vmem [resolvable:$true] %s191_s6 }
  0x10   : > { %p1931_p12 = scmp.ne.s32.totalorder %s3776_s1, %s1930_s9  ;;  %p1937_p5 = scmp.lt.u32.totalorder %s1930_s9, %s3776_s1 }
  0x11   : > { %p2180_p11 = pnand %p1834_p9, %p3781_p1 }
  0x13   : > { %p1932_p13 = pneg %p2180_p11 }
  0x15   : > { %p1933_p0 = pnand %p1932_p13, %p1931_p12 }
  0x17   : > { %p1934_p3 = pneg %p1933_p0 }
  0x19   : > { %p1939_p7 = pnand %p1937_p5, %p1934_p3 }
  0x1b   : > { %1942 = shalt.err (!%p1939_p7)
}
  0x1c   : > { %s1943_s14 = scalar_lea.vmem %s2173_s28, 256  ;;  %p1951_p2 = scmp.lt.s32.totalorder %s2173_s28, %s2173_s28 }
  0x1d   : > { %p1944_p9 = scmp.ne.s32.totalorder %s2173_s28, %s1943_s14  ;;  %p1952_p12 = scmp.lt.s32.totalorder %s1943_s14, %s1943_s14 }
  0x1f   : > { %p1946_p10 = pnand %p1944_p9, %p1932_p13  ;;  %p1953_p0 = por %p1952_p12, %p1951_p2 }
  0x21   : > { %p1947_p1 = pneg %p1946_p10 }
  0x23   : > { %p1954_p6 = pnand %p1953_p0, %p1947_p1 }
  0x25   : > { %1957 = shalt.err (!%p1954_p6)
}
  0x26   : > { %s2090_s15 = smov 128   ;;  %s2091_s16 = smov 8  }
  0x27   : > { %1837 = dma.hbm_to_vmem [thread:$0]  (!%p2180_p11), %s3776_s1, 256, %s2173_s28, [#allocation6], %s2090_s15, %s2090_s15, %s2091_s16  }
  0x28   : > { %s1958_s7 = scalar_lea.hbm %s3778_s3, 2048 }
  0x29   : > { %p1959_p1 = scmp.ne.s32.totalorder %s3778_s3, %s1958_s7  ;;  %p1965_p10 = scmp.lt.u32.totalorder %s1958_s7, %s3778_s3 }
  0x2b   : > { %p1961_p2 = pnand %p1959_p1, %p1932_p13 }
  0x2d   : > { %p1962_p6 = pneg %p1961_p2 }
  0x2f   : > { %p1967_p3 = pnand %p1965_p10, %p1962_p6 }
  0x31   : > { %1970 = shalt.err (!%p1967_p3)
}
  0x32   : > { %s1971_s28 = scalar_lea.vmem %s2184_s6, 2048  ;;  %p1979_p12 = scmp.lt.s32.totalorder %s2184_s6, %s2184_s6 }
  0x33   : > { %p1972_p5 = scmp.ne.s32.totalorder %s2184_s6, %s1971_s28  ;;  %p1980_p0 = scmp.lt.s32.totalorder %s1971_s28, %s1971_s28 }
  0x35   : > { %p1974_p7 = pnand %p1972_p5, %p1932_p13  ;;  %p1981_p1 = por %p1980_p0, %p1979_p12 }
  0x37   : > { %p1975_p9 = pneg %p1974_p7 }
  0x39   : > { %p1982_p2 = pnand %p1981_p1, %p1975_p9 }
  0x3b   : > { %1985 = shalt.err (!%p1982_p2)
}
  0x3c   : > { %1840 = dma.hbm_to_vmem [thread:$0]  (!%p2180_p11), %s3778_s3, 2048, %s2184_s6, [#allocation6], %s2090_s15, %s2090_s15, %s2091_s16  }
  0x3d   : > { %s2245_s29 = sadd.s32 1, %s2086_s21   ;;  %s29_s14 = sadd.s32 1, %s2082_s20 }
  0x3e   : > { %s26_s17 = ssub.s32 %s2086_s21, %s2245_s29  ;;  %p36_p13 = scmp.ne.s32.totalorder %s2082_s20, %s2078_s19 }
  0x3f   : > { %p27_p6 = scmp.eq.s32.totalorder %s26_s17, 0  ;;  %p37_p10 = scmp.eq.s32.totalorder %s2086_s21, 0 }
  0x40   : > { %p3808_p3 = scmp.eq.s32.totalorder %s2150_s22, 1  ;;  %p1851_p7 = scmp.lt.s32.totalorder %s2086_s21, 2 }
  0x41   : > { %s2261_s27 = scalar_select %p27_p6, %s2082_s20, %s29_s14  }
  0x42   : > { %p2255_p5 = por %p3808_p3, %p36_p13  ;;  %p38_p9 = por %p37_p10, %p36_p13 }
  0x43   : > { %s208_s30 = sand.u32 1, %s2082_s20   ;;  %s1803_s6 = sshll.u32 %s2086_s21, 11 }
  0x44   : > { %s3809_s23 = scalar_select %p2255_p5, 1, 0 }
  0x45   : > { %s1763_s7 = sshll.u32 %s208_s30, 7  ;;  %s2268_s10 = scalar_lea.hbm %s3775_s0, %s1803_s6 }
  0x46   : > { %s212_s11 = scalar_lea.vmem [#allocation2], %s1763_s7  ;;  %p2272_p11 = pnand %p1851_p7, %p38_p9 }
  0x47   : > { %s219_s28 = sshll.u32 %s212_s11, 4  ;;  %s2276_s13 = scalar_lea.sflag [#allocation3], %s208_s30  ;;  %s2270_s28 = int_to_ptr.vmem [resolvable:$true] %s219_s28 }
  0x48   : > { %s1986_s14 = scalar_lea.hbm %s2268_s10, 2048  ;;  %p1988_p0 = pneg %p2272_p11 }
  0x49   : > { %p1987_p12 = scmp.ne.s32.totalorder %s2268_s10, %s1986_s14  ;;  %s1991_s6 = scalar_lea.hbm %s3775_s0, 4096 }
  0x4a   : > { %p1992_p13 = scmp.lt.u32.totalorder %s2268_s10, %s3775_s0  ;;  %p1993_p6 = scmp.lt.u32.totalorder %s1991_s6, %s1986_s14 }
  0x4b   : > { %p1989_p1 = pnand %p1988_p0, %p1987_p12  ;;  %p1995_p3 = scmp.lt.u32.totalorder %s1986_s14, %s2268_s10 }
  0x4c   : > { %p1994_p10 = por %p1993_p6, %p1992_p13 }
  0x4d   : > { %p1990_p2 = pneg %p1989_p1 }
  0x4e   : > { %p1996_p7 = por %p1995_p3, %p1994_p10 }
  0x50   : > { %p1997_p9 = pnand %p1996_p7, %p1990_p2 }
  0x52   : > { %2000 = shalt.err (!%p1997_p9)
}
  0x53   : > { %s2001_s30 = scalar_lea.vmem %s2270_s28, 2048  ;;  %s2092_s11 = smov [#allocation2]  }
  0x54   : > { %p2002_p12 = scmp.ne.s32.totalorder %s2270_s28, %s2001_s30  ;;  %s2006_s17 = sshll.u32 %s2092_s11, 4  ;;  %s2007_s17 = int_to_ptr.vmem [resolvable:$false] %s2006_s17 }
  0x55   : > { %s2008_s7 = scalar_lea.vmem %s2007_s17, 4096  ;;  %p2009_p4 = scmp.lt.s32.totalorder %s2270_s28, %s2007_s17 }
  0x56   : > { %p2004_p1 = pnand %p2002_p12, %p1988_p0  ;;  %p2010_p13 = scmp.lt.s32.totalorder %s2008_s7, %s2001_s30 }
  0x58   : > { %p2005_p5 = pneg %p2004_p1  ;;  %p2011_p6 = por %p2010_p13, %p2009_p4 }
  0x5a   : > { %p2012_p10 = pnand %p2011_p6, %p2005_p5 }
  0x5c   : > { %2015 = shalt.err (!%p2012_p10)
}
  0x5d   : > { %1844 = dma.hbm_to_vmem [thread:$0]  (!%p2272_p11), %s2268_s10, 2048, %s2270_s28, %s2276_s13, %s2090_s15, %s2090_s15, %s2091_s16  }
  0x5e   : > { %231 = sbr.rel (%p2169_p8) target bundleno = 663 (0x297), region = 40 }
  0x65   : > { %s2310_s14 = sand.u32 1, %s2078_s19   ;;  %p3811_p4 = scmp.ne.s32.totalorder %s3804_s24, 0 }
  0x66   : > { %s1767_s6 = sshll.u32 %s2310_s14, 7  ;;  %s234_s8 = scalar_lea.sflag [#allocation3], %s2310_s14 }
  0x67   : > { %s2314_s9 = scalar_lea.vmem [#allocation2], %s1767_s6 }
  0x68   : > { %2061 = dma.done.wait (%p3811_p4), %s234_s8, 2048  }
  0x69   : > { %2063 = vsyncadd (%p3811_p4), %s234_s8, 4294965248  ;;  %p3812_p5 = scmp.eq.s32.totalorder %s2150_s22, 0 }
  0x6b   : > { %2065 = dma.done.wait (%p3812_p5), [#allocation6], 2304   ;;  %p3813_p8 = pmov %p3812_p5 }
  0x6c   : > { %v291_v0 = vlaneseq  ;;  %v2328_v2 = vld [vmem:[%s2314_s9 + $0x38] sm:$0xff]  ;;  %v2331_v3 = vld [vmem:[%s2314_s9 + $0x40] sm:$0xff]  ;;  %v2344_v9 = vld [vmem:[%s2314_s9 + $0x48] sm:$0xff]  ;;  %s2093_s24 = smov 8   ;;  %s2094_s26 = smov 120  }
  0x6d   : > { %2067 = vsyncadd (%p3813_p8), [#allocation6], 4294964992  ;;  %v2335_v4 = vld [vmem:[%s2314_s9] sm:$0xff]  ;;  %v543_v5 = vrot.slane %v2328_v2, 7  ;;  %v544_v6 = vrot.slane %v2331_v3, 7  ;;  %v2340_v7 = vld [vmem:[%s2314_s9 + $0x78] sm:$0xff] }
  0x6e   : > { %v2325_v1 = vshrl.u32 %v291_v0, 7  ;;  %v536_v8 = vrot.slane %v2335_v4, 7  ;;  %v2347_v10 = vld [vmem:[%s2314_s9 + $0x8] sm:$0xff]  ;;  %v551_v11 = vrot.slane %v2340_v7, 7  ;;  %v545_v12 = vrot.slane %v2344_v9, 7  ;;  %v2381_v18 = vld [vmem:[%s2314_s9 + $0x30] sm:$0xff] }
  0x6f   : > { %v537_v13 = vrot.slane %v2347_v10, 7  ;;  %v2384_v19 = vld [vmem:[%s2314_s9 + $0x70] sm:$0xff]  ;;  %v542_v20 = vrot.slane %v2381_v18, 7  ;;  %v2396_v23 = vld [vmem:[%s2314_s9 + $0x18] sm:$0xff]  ;;  %v1899_v38 = vld [vmem:[#allocation7 + $0x14] ss:$8 sps:$4 sm:$0xff]  }
  0x70   : > { %vm552_vm0 = vcmp.lt.s32.totalorder %v2325_v1, 1  ;;  %v550_v21 = vrot.slane %v2384_v19, 7  ;;  %v2393_v22 = vld [vmem:[%s2314_s9 + $0x10] sm:$0xff]  ;;  %v539_v27 = vrot.slane %v2396_v23, 7  ;;  %v2420_v29 = vld [vmem:[%s2314_s9 + $0x58] sm:$0xff]  ;;  %v1032_v42 = vrot.slane %v2347_v10, 1 }
  0x71   : > { %v2354_v14 = vsel %vm552_vm0, %v543_v5, %v544_v6  ;;  %v2360_v15 = vsel %vm552_vm0, %v551_v11, %v536_v8  ;;  %v2366_v16 = vsel %vm552_vm0, %v544_v6, %v545_v12  ;;  %v2370_v17 = vsel %vm552_vm0, %v536_v8, %v537_v13  ;;  %3814 = vst [vmem:[#allocation12_spill] sm:$0xff] %v2393_v22  ;;  %v2417_v28 = vld [vmem:[%s2314_s9 + $0x50] sm:$0xff]  ;;  %v1901_v39 = vld [vmem:[#allocation7 + $0x10] ss:$8 sps:$4 sm:$0xff]   ;;  %v1905_v44 = vld [vmem:[#allocation7 + $0x34] ss:$8 sps:$4 sm:$0xff]  }
  0x72   : > { %585 = vrot.lane.b32.xlu1 %v2354_v14, %s2093_s24  ;;  %569 = vrot.lane.b32.xlu0 %v2360_v15, %s2093_s24  ;;  %v2402_v24 = vsel %vm552_vm0, %v542_v20, %v543_v5  ;;  %v2408_v25 = vsel %vm552_vm0, %v550_v21, %v551_v11  ;;  %v538_v26 = vrot.slane %v2393_v22, 7  ;;  %3815 = vst [vmem:[#allocation13_spill] sm:$0xff] %v2417_v28  ;;  %v546_v31 = vrot.slane %v2417_v28, 7  ;;  %v1896_v36 = vld [vmem:[#allocation7 + $0x4] ss:$8 sps:$4 sm:$0xff]   ;;  %v2530_v8 = vld [vmem:[%s2314_s9 + $0x20] sm:$0xff] }
  0x73   : > { %v547_v32 = vrot.slane %v2420_v29, 7  ;;  %v1898_v37 = vld [vmem:[#allocation7] ss:$8 sps:$4 sm:$0xff]   ;;  %1474 = vmatprep.subr.bf16.mxu0 %v1896_v36  ;;  %1806 = vmatprep.subr.bf16.mxu1 %v1896_v36  ;;  %v1902_v40 = vld [vmem:[#allocation7 + $0x24] ss:$8 sps:$4 sm:$0xff]   ;;  %v1033_v43 = vrot.slane %v2393_v22, 1 }
  0x74   : > { %v2430_v30 = vsel %vm552_vm0, %v538_v26, %v539_v27  ;;  %v2436_v33 = vsel %vm552_vm0, %v537_v13, %v538_v26  ;;  %v2450_v35 = vsel %vm552_vm0, %v545_v12, %v546_v31  ;;  %1475 = vmatpush1.bf16.msra.mxu0 %v1898_v37  ;;  %1814 = vmatpush1.bf16.msra.mxu1 %v1898_v37  ;;  %v1904_v41 = vld [vmem:[#allocation7 + $0x20] ss:$8 sps:$4 sm:$0xff]   ;;  %vm1047_vm1 = vcmp.lt.s32.totalorder %v2325_v1, 7  ;;  %v1907_v46 = vld [vmem:[#allocation7 + $0x30] ss:$8 sps:$4 sm:$0xff]   ;;  %s1770_s12 = sshll.u32 %s2310_s14, 8 }
  0x75   : > { %v2446_v34 = vsel %vm552_vm0, %v546_v31, %v547_v32  ;;  %1476 = vmatprep.subr.bf16.mxu0 %v1899_v38  ;;  %1807 = vmatprep.subr.bf16.mxu1 %v1899_v38  ;;  %v1031_v45 = vrot.slane %v2335_v4, 1  ;;  %v2480_v47 = vsel %vm1047_vm1, %v1032_v42, %v1033_v43  ;;  %v1040_v48 = vrot.slane %v2344_v9, 1  ;;  %v1908_v50 = vld [vmem:[#allocation7 + $0x44] ss:$8 sps:$4 sm:$0xff]   ;;  %v1910_v53 = vld [vmem:[#allocation7 + $0x40] ss:$8 sps:$4 sm:$0xff]  }
  0x76   : > { %587 = vrot.lane.b32.xlu1 %v2366_v16, %s2093_s24  ;;  %571 = vrot.lane.b32.xlu0 %v2370_v17, %s2093_s24  ;;  %v1041_v49 = vrot.slane %v2417_v28, 1  ;;  %v1039_v52 = vrot.slane %v2331_v3, 1  ;;  %v3787_v54 = vrot.slane %v2328_v2, 1  ;;  %v1911_v57 = vld [vmem:[#allocation7 + $0x54] ss:$8 sps:$4 sm:$0xff]   ;;  %v3786_v60 = vrot.slane %v2340_v7, 1 }
  0x77   : > { %v2486_v51 = vsel %vm1047_vm1, %v1031_v45, %v1032_v42  ;;  %v1913_v59 = vld [vmem:[#allocation7 + $0x50] ss:$8 sps:$4 sm:$0xff]   ;;  %v1914_v62 = vld [vmem:[#allocation7 + $0x64] ss:$8 sps:$4 sm:$0xff]   ;;  %v1916_v63 = vld [vmem:[#allocation7 + $0x60] ss:$8 sps:$4 sm:$0xff]  }
  0x78   : > { %1477 = vmatpush1.bf16.msra.mxu0 %v1901_v39  ;;  %1815 = vmatpush1.bf16.msra.mxu1 %v1901_v39  ;;  %v2496_v55 = vsel %vm1047_vm1, %v3787_v54, %v1039_v52  ;;  %v2504_v56 = vsel %vm1047_vm1, %v1040_v48, %v1041_v49  ;;  %v2508_v58 = vsel %vm1047_vm1, %v1039_v52, %v1040_v48  ;;  %v1917_v5 = vld [vmem:[#allocation7 + $0x74] ss:$8 sps:$4 sm:$0xff]   ;;  %v1919_v6 = vld [vmem:[#allocation7 + $0x70] ss:$8 sps:$4 sm:$0xff]   ;;  %v3784_v12 = vmov 0   ;;  %s3662_s13 = scalar_lea.vmem [#allocation8], %s1770_s12 }
  0x79   : > { %1478 = vmatprep.subr.bf16.mxu0 %v1902_v40  ;;  %1808 = vmatprep.subr.bf16.mxu1 %v1902_v40  ;;  %v2517_v61 = vsel %vm1047_vm1, %v3786_v60, %v1031_v45  ;;  %v2533_v11 = vld [vmem:[%s2314_s9 + $0x28] sm:$0xff]  ;;  %v540_v13 = vrot.slane %v2530_v8, 7  ;;  %v2544_v31 = vld [vmem:[%s2314_s9 + $0x60] sm:$0xff]  ;;  %v1042_v45 = vrot.slane %v2420_v29, 1  ;;  %s1805_s30 = sshll.u32 %s2150_s22, 12  ;;  %s1666_s11 = sshll.u32 %s3662_s13, 4  ;;  %s3728_s11 = int_to_ptr.vmem [resolvable:$true] %s1666_s11 }
  0x7a   : > { %725 = vrot.lane.b32.xlu1 %v2370_v17, %s2094_s26  ;;  %723 = vrot.lane.b32.xlu0 %v2360_v15, %s2094_s26  ;;  %v541_v26 = vrot.slane %v2533_v11, 7  ;;  %v2547_v36 = vld [vmem:[%s2314_s9 + $0x68] sm:$0xff]  ;;  %v548_v38 = vrot.slane %v2544_v31, 7  ;;  %v2764_v60 = vld [vmem:[#allocation5 + $0x3] ss:$0 sm:$0xff]  ;;  %s3726_s6 = scalar_lea.hbm %s3780_s5, %s1805_s30  ;;  %s1652_s22 = scalar_lea.sflag [#allocation4], %s2310_s14 }
  0x7b   : > { %1506 = vmatprep.mubr.bf16.mxu0 %v3784_v12  ;;  %1546 = vmatprep.mubr.bf16.mxu1 %v3784_v12  ;;  %v549_v39 = vrot.slane %v2547_v36, 7  ;;  %v2563_v40 = vsel %vm552_vm0, %v539_v27, %v540_v13  ;;  %v1034_v27 = vrot.slane %v2396_v23, 1  ;;  %v2629_v52 = vsel %vm1047_vm1, %v1041_v49, %v1042_v45  ;;  %v2703_v12 = vld [vmem:[#allocation5] ss:$0 sm:$0xff]  ;;  %s2016_s8 = scalar_lea.vmem %s3728_s11, 4096  ;;  %p3915_p0 = scmp.ne.s32.totalorder %s3809_s23, 0 }
  0x7c   : > { %1479 = vmatpush1.bf16.msra.mxu0 %v1904_v41  ;;  %1816 = vmatpush1.bf16.msra.mxu1 %v1904_v41  ;;  %v2555_v37 = vsel %vm552_vm0, %v540_v13, %v541_v26  ;;  %v2577_v42 = vsel %vm552_vm0, %v547_v32, %v548_v38  ;;  %v3789_v32 = vrot.slane %v2530_v8, 1  ;;  %3820 = vst [vmem:[#allocation18_spill] sm:$0xff] %v2629_v52  ;;  %v300_v49 = vadd.s32 64, %v2325_v1  ;;  %p2017_p11 = scmp.ne.s32.totalorder %s3728_s11, %s2016_s8 }
  0x7d   : > { %1480 = vmatprep.subr.bf16.mxu0 %v1905_v44  ;;  %1809 = vmatprep.subr.bf16.mxu1 %v1905_v44  ;;  %3816 = vst [vmem:[#allocation14_spill] sm:$0xff] %v2555_v37  ;;  %v2571_v41 = vsel %vm552_vm0, %v548_v38, %v549_v39  ;;  %v2613_v48 = vsel %vm1047_vm1, %v1033_v43, %v1034_v27  ;;  %v2648_v43 = vand.u32 127, %v291_v0 }
  0x7e   : > { %741 = vrot.lane.b32.xlu1 %v2366_v16, %s2094_s26  ;;  %739 = vrot.lane.b32.xlu0 %v2354_v14, %s2094_s26  ;;  %3817 = vst [vmem:[#allocation15_spill] sm:$0xff] %v2571_v41  ;;  %v2605_v44 = vsel %vm1047_vm1, %v1034_v27, %v3789_v32  ;;  %3818 = vst [vmem:[#allocation16_spill] sm:$0xff] %v2613_v48  ;;  %v2688_v38 = vsel %vm552_vm0, %v549_v39, %v550_v21  ;;  %p2018_p2 = pnand %p2017_p11, %p3915_p0 }
  0x7f   : > { %vm534_vm2 = vcmp.ge.s32.totalorder %v2648_v43, 8  ;;  %vm535_vm4 = vcmp.lt.s32.totalorder %v2648_v43, 120  ;;  %3828 = vst [vmem:[#allocation20_spill] sm:$0xff] %v2688_v38 }
  0x80   : > { %1481 = vmatpush1.bf16.msra.mxu0 %v1907_v46  ;;  %1817 = vmatpush1.bf16.msra.mxu1 %v1907_v46  ;;  %v3788_v46 = vrot.slane %v2544_v31, 1  ;;  %p2019_p3 = pneg %p2018_p2 }
  0x81   : > { %1482 = vmatprep.subr.bf16.mxu0 %v1908_v50  ;;  %1810 = vmatprep.subr.bf16.mxu1 %v1908_v50 }
  0x82   : > { %826 = vrot.lane.b32.xlu1 %v2347_v10, %s2093_s24  ;;  %824 = vrot.lane.b32.xlu0 %v2335_v4, %s2093_s24  ;;  %v2623_v50 = vsel %vm1047_vm1, %v1042_v45, %v3788_v46 }
  0x83   : > { %3819 = vst [vmem:[#allocation17_spill] sm:$0xff] %v2623_v50 }
  0x84   : > { %1483 = vmatpush1.bf16.msra.mxu0 %v1910_v53  ;;  %1818 = vmatpush1.bf16.msra.mxu1 %v1910_v53 }
  0x85   : > { %1484 = vmatprep.subr.bf16.mxu0 %v1911_v57  ;;  %1811 = vmatprep.subr.bf16.mxu1 %v1911_v57  ;;  %v314_v57 = vand.u32 15, %v2325_v1 }
  0x86   : > { %842 = vrot.lane.b32.xlu1 %v2344_v9, %s2093_s24  ;;  %840 = vrot.lane.b32.xlu0 %v2331_v3, %s2093_s24 }
  0x87   : > { %vm2657_vm3 = vcmp.gt.s32.totalorder %v314_v57, 0  ;;  %v294_v57 = vadd.s32 16, %v2325_v1 }
  0x88   : > { %1485 = vmatpush1.bf16.msra.mxu0 %v1913_v59  ;;  %1819 = vmatpush1.bf16.msra.mxu1 %v1913_v59  ;;  %vm2674_vm5 = vmand %vm2657_vm3, %vm534_vm2  ;;  %v670_v39 = vsel %vm2657_vm3, %v2360_v15, 0.0 }
  0x89   : > { %1486 = vmatprep.subr.bf16.mxu0 %v1914_v62  ;;  %1812 = vmatprep.subr.bf16.mxu1 %v1914_v62  ;;  %v370_v62 = vand.u32 15, %v300_v49  ;;  %vm2696_vm7 = vmand %vm2657_vm3, %vm535_vm4  ;;  %v328_v45 = vand.u32 15, %v294_v57 }
  0x8a   : > { %575 = vrot.lane.b32.xlu1 %v2430_v30, %s2093_s24  ;;  %573 = vrot.lane.b32.xlu0 %v2436_v33, %s2093_s24 }
  0x8b   : > { %vm2680_vm6 = vcmp.gt.s32.totalorder %v370_v62, 0  ;;  %v2701_v62 = vld [vmem:[#allocation5 + $0x1] ss:$0 sm:$0xff]  ;;  %vm2776_vm10 = vcmp.gt.s32.totalorder %v328_v45, 0 }
  0x8c   : > { %1487 = vmatpush1.bf16.msra.mxu0 %v1916_v63  ;;  %1820 = vmatpush1.bf16.msra.mxu1 %v1916_v63  ;;  %vm2718_vm8 = vmand %vm2680_vm6, %vm534_vm2  ;;  %v2725_v63 = vld [vmem:[#allocation5 + $0x2] ss:$0 sm:$0xff]  ;;  %v692_v13 = vmul.f32 %v2701_v62, %v2370_v17  ;;  %v1036_v17 = vrot.slane %v2533_v11, 1 }
  0x8d   : > { %1488 = vmatprep.subr.bf16.mxu0 %v1917_v5  ;;  %1813 = vmatprep.subr.bf16.mxu1 %v1917_v5  ;;  %v2665_v5 = vsel %vm552_vm0, %v541_v26, %v542_v20  ;;  %vm2747_vm9 = vmand %vm2680_vm6, %vm535_vm4 }
  0x8e   : > { %591 = vrot.lane.b32.xlu1 %v2446_v34, %s2093_s24  ;;  %589 = vrot.lane.b32.xlu0 %v2450_v35, %s2093_s24  ;;  %3823 = vst [vmem:[#allocation19_spill] sm:$0xff] %v2665_v5  ;;  %vm2815_vm12 = vmand %vm2776_vm10, %vm534_vm2 }
  0x90   : > { %1489 = vmatpush1.bf16.msra.mxu0 %v1919_v6  ;;  %1821 = vmatpush1.bf16.msra.mxu1 %v1919_v6 }
  0x92   : > { %948 = vrot.lane.b32.xlu1 %v2347_v10, %s2094_s26  ;;  %946 = vrot.lane.b32.xlu0 %v2335_v4, %s2094_s26 }
  0x96   : > { %964 = vrot.lane.b32.xlu1 %v2344_v9, %s2094_s26  ;;  %962 = vrot.lane.b32.xlu0 %v2331_v3, %s2094_s26 }
  0x9a   : > { %729 = vrot.lane.b32.xlu1 %v2430_v30, %s2094_s26  ;;  %727 = vrot.lane.b32.xlu0 %v2436_v33, %s2094_s26 }
  0x9e   : > { %745 = vrot.lane.b32.xlu1 %v2446_v34, %s2094_s26  ;;  %743 = vrot.lane.b32.xlu0 %v2450_v35, %s2094_s26 }
  0xa2   : > { %1066 = vrot.lane.b32.xlu1 %v2480_v47, %s2093_s24  ;;  %1064 = vrot.lane.b32.xlu0 %v2486_v51, %s2093_s24 }
  0xa6   : > { %1082 = vrot.lane.b32.xlu1 %v2504_v56, %s2093_s24  ;;  %1080 = vrot.lane.b32.xlu0 %v2508_v58, %s2093_s24 }
  0xaa   : > { %830 = vrot.lane.b32.xlu1 %v2396_v23, %s2093_s24  ;;  %828 = vrot.lane.b32.xlu0 %v2393_v22, %s2093_s24 }
  0xae   : > { %846 = vrot.lane.b32.xlu1 %v2420_v29, %s2093_s24  ;;  %844 = vrot.lane.b32.xlu0 %v2417_v28, %s2093_s24 }
  0xb2   : > { %1220 = vrot.lane.b32.xlu1 %v2480_v47, %s2094_s26  ;;  %1218 = vrot.lane.b32.xlu0 %v2486_v51, %s2094_s26 }
  0xb6   : > { %1236 = vrot.lane.b32.xlu1 %v2504_v56, %s2094_s26  ;;  %1234 = vrot.lane.b32.xlu0 %v2508_v58, %s2094_s26 }
  0xba   : > { %579 = vrot.lane.b32.xlu1 %v2555_v37, %s2093_s24  ;;  %577 = vrot.lane.b32.xlu0 %v2563_v40, %s2093_s24 }
  0xbe   : > { %595 = vrot.lane.b32.xlu1 %v2571_v41, %s2093_s24  ;;  %593 = vrot.lane.b32.xlu0 %v2577_v42, %s2093_s24 }
  0xc2   : > { %952 = vrot.lane.b32.xlu1 %v2396_v23, %s2094_s26  ;;  %950 = vrot.lane.b32.xlu0 %v2393_v22, %s2094_s26 }
  0xc6   : > { %968 = vrot.lane.b32.xlu1 %v2420_v29, %s2094_s26  ;;  %966 = vrot.lane.b32.xlu0 %v2417_v28, %s2094_s26 }
  0xca   : > { %733 = vrot.lane.b32.xlu1 %v2555_v37, %s2094_s26  ;;  %731 = vrot.lane.b32.xlu0 %v2563_v40, %s2094_s26 }
  0xce   : > { %749 = vrot.lane.b32.xlu1 %v2571_v41, %s2094_s26  ;;  %747 = vrot.lane.b32.xlu0 %v2577_v42, %s2094_s26 }
  0xd2   : > { %1070 = vrot.lane.b32.xlu1 %v2605_v44, %s2093_s24  ;;  %1068 = vrot.lane.b32.xlu0 %v2613_v48, %s2093_s24 }
  0xd6   : > { %1086 = vrot.lane.b32.xlu1 %v2623_v50, %s2093_s24  ;;  %1084 = vrot.lane.b32.xlu0 %v2629_v52, %s2093_s24 }
  0xda   : > { %834 = vrot.lane.b32.xlu1 %v2533_v11, %s2093_s24  ;;  %832 = vrot.lane.b32.xlu0 %v2530_v8, %s2093_s24 }
  0xde   : > { %850 = vrot.lane.b32.xlu1 %v2547_v36, %s2093_s24  ;;  %848 = vrot.lane.b32.xlu0 %v2544_v31, %s2093_s24 }
  0xe2   : > { %1224 = vrot.lane.b32.xlu1 %v2605_v44, %s2094_s26  ;;  %1222 = vrot.lane.b32.xlu0 %v2613_v48, %s2094_s26 }
  0xe4   : > { %v586_v53 = vpop.permute.xlu1 %585  ;;  %v570_v59 = vpop.permute.xlu0 %569 }
  0xe5   : > { %v617_v21 = vsel %vm2674_vm5, %v570_v59, 0.0  ;;  %v678_v59 = vsel %vm2680_vm6, %v2354_v14, 0.0  ;;  %v302_v14 = vadd.s32 80, %v2325_v1 }
  0xe6   : > { %1240 = vrot.lane.b32.xlu1 %v2623_v50, %s2094_s26  ;;  %1238 = vrot.lane.b32.xlu0 %v2629_v52, %s2094_s26  ;;  %v638_v41 = vmul.f32 %v2703_v12, %v617_v21  ;;  %v699_v21 = vmul.f32 %v2701_v62, %v678_v59 }
  0xe7   : > { %v384_v48 = vand.u32 15, %v302_v14 }
  0xe8   : > { %v588_v0 = vpop.permute.xlu1 %587  ;;  %v572_v6 = vpop.permute.xlu0 %571 }
  0xe9   : > { %v618_v27 = vsel %vm534_vm2, %v572_v6, 0.0  ;;  %v700_v6 = vmul.f32 %v2701_v62, %v2366_v16  ;;  %v2731_v16 = vld [vmem:[#allocation5 + $0x4] ss:$0 sm:$0xff]  ;;  %v626_v37 = vsel %vm534_vm2, %v588_v0, 0.0  ;;  %vm2791_vm11 = vcmp.gt.s32.totalorder %v384_v48, 0 }
  0xea   : > { %583 = vrot.lane.b32.xlu1 %v2402_v24, %s2093_s24  ;;  %581 = vrot.lane.b32.xlu0 %v2665_v5, %s2093_s24  ;;  %v639_v54 = vmul.f32 %v2703_v12, %v618_v27  ;;  %v915_v0 = vmul.f32 %v2731_v16, %v2347_v10  ;;  %v923_v57 = vmul.f32 %v2731_v16, %v2344_v9  ;;  %vm611_vm13 = vmand %vm2791_vm11, %vm534_vm2 }
  0xeb   : > { %v647_v59 = vmul.f32 %v2703_v12, %v626_v37 }
  0xec   : > { %v726_v26 = vpop.permute.xlu1 %725  ;;  %v724_v49 = vpop.permute.xlu0 %723 }
  0xed   : > { %v772_v15 = vsel %vm535_vm4, %v726_v26, 0.0  ;;  %v771_v46 = vsel %vm2696_vm7, %v724_v49, 0.0  ;;  %v691_v26 = vmul.f32 %v2701_v62, %v670_v39  ;;  %v625_v49 = vsel %vm2718_vm8, %v586_v53, 0.0 }
  0xee   : > { %599 = vrot.lane.b32.xlu1 %v2408_v25, %s2093_s24  ;;  %597 = vrot.lane.b32.xlu0 %v2688_v38, %s2093_s24  ;;  %v793_v39 = vmul.f32 %v2725_v63, %v772_v15  ;;  %v792_v20 = vmul.f32 %v2725_v63, %v771_v46  ;;  %v914_v53 = vmul.f32 %v2731_v16, %v2335_v4 }
  0xef   : > { %v708_v15 = vadd.f32 %v692_v13, %v639_v54  ;;  %v707_v28 = vadd.f32 %v691_v26, %v638_v41 }
  0xf0   : > { %v742_v32 = vpop.permute.xlu1 %741  ;;  %v740_v27 = vpop.permute.xlu0 %739 }
  0xf1   : > { %v780_v52 = vsel %vm535_vm4, %v742_v32, 0.0  ;;  %v779_v10 = vsel %vm2747_vm9, %v740_v27, 0.0  ;;  %v646_v32 = vmul.f32 %v2703_v12, %v625_v49  ;;  %v809_v9 = vadd.f32 %v793_v39, %v708_v15 }
  0xf2   : > { %956 = vrot.lane.b32.xlu1 %v2533_v11, %s2094_s26  ;;  %954 = vrot.lane.b32.xlu0 %v2530_v8, %s2094_s26  ;;  %v801_v37 = vmul.f32 %v2725_v63, %v780_v52  ;;  %v808_v41 = vadd.f32 %v792_v20, %v707_v28  ;;  %v800_v14 = vmul.f32 %v2725_v63, %v779_v10  ;;  %v672_v15 = vsel %vm2776_vm10, %v2436_v33, 0.0 }
  0xf3   : > { %v716_v27 = vadd.f32 %v700_v6, %v647_v59  ;;  %v715_v49 = vadd.f32 %v699_v21, %v646_v32 }
  0xf4   : > { %v827_v46 = vpop.permute.xlu1 %826  ;;  %v825_v50 = vpop.permute.xlu0 %824 }
  0xf5   : > { %v857_v22 = vsel %vm534_vm2, %v827_v46, 0.0  ;;  %v856_v13 = vsel %vm534_vm2, %v825_v50, 0.0  ;;  %v3798_v50 = vrot.slane %v2381_v18, 1  ;;  %v817_v10 = vadd.f32 %v801_v37, %v716_v27 }
  0xf6   : > { %v878_v54 = vmul.f32 %v2764_v60, %v857_v22  ;;  %972 = vrot.lane.b32.xlu1 %v2547_v36, %s2094_s26  ;;  %v877_v26 = vmul.f32 %v2764_v60, %v856_v13  ;;  %970 = vrot.lane.b32.xlu0 %v2544_v31, %s2094_s26  ;;  %v816_v21 = vadd.f32 %v800_v14, %v715_v49  ;;  %v3797_v49 = vrot.slane %v2384_v19, 1 }
  0xf7   : > { %v693_v14 = vmul.f32 %v2701_v62, %v672_v15  ;;  %v3841_v15 = vrot.slane %v2530_v8, 1  ;;  %v925_v22 = vmul.f32 %v2731_v16, %v2420_v29 }
  0xf8   : > { %v894_v52 = vadd.f32 %v878_v54, %v809_v9  ;;  %v843_v45 = vpop.permute.xlu1 %842  ;;  %v893_v28 = vadd.f32 %v877_v26, %v808_v41  ;;  %v841_v20 = vpop.permute.xlu0 %840  ;;  %v694_v9 = vmul.f32 %v2701_v62, %v2430_v30  ;;  %v2840_v30 = vsel %vm1047_vm1, %v1036_v17, %v3798_v50 }
  0xf9   : > { %v865_v39 = vsel %vm534_vm2, %v843_v45, 0.0  ;;  %v864_v48 = vsel %vm534_vm2, %v841_v20, 0.0 }
  0xfa   : > { %v886_v6 = vmul.f32 %v2764_v60, %v865_v39  ;;  %737 = vrot.lane.b32.xlu1 %v2402_v24, %s2094_s26  ;;  %v2806_v59 = vadd.f32 %v915_v0, %v894_v52  ;;  %v885_v46 = vmul.f32 %v2764_v60, %v864_v48  ;;  %735 = vrot.lane.b32.xlu0 %v2665_v5, %s2094_s26 }
  0xfb   : > { %v2819_v32 = vadd.f32 %v914_v53, %v893_v28  ;;  %v922_v0 = vmul.f32 %v2731_v16, %v2331_v3  ;;  %v680_v53 = vsel %vm2791_vm11, %v2450_v35, 0.0  ;;  %v1044_v35 = vrot.slane %v2547_v36, 1 }
  0xfc   : > { %v902_v37 = vadd.f32 %v886_v6, %v817_v10  ;;  %v576_v54 = vpop.permute.xlu1 %575  ;;  %v901_v13 = vadd.f32 %v885_v46, %v816_v21  ;;  %v574_v26 = vpop.permute.xlu0 %573  ;;  %v2863_v10 = vsel %vm1047_vm1, %v3841_v15, %v1036_v17  ;;  %v701_v21 = vmul.f32 %v2701_v62, %v680_v53 }
  0xfd   : > { %v620_v41 = vsel %vm534_vm2, %v576_v54, 0.0  ;;  %v619_v3 = vsel %vm2815_vm12, %v574_v26, 0.0  ;;  %3842 = vst [vmem:[#allocation21_spill] sm:$0xff] %v2863_v10  ;;  %v2880_v17 = vsel %vm1047_vm1, %v1044_v35, %v3797_v49  ;;  %vm3121_vm12 = vmand %vm2776_vm10, %vm535_vm4 }
  0xfe   : > { %v641_v27 = vmul.f32 %v2703_v12, %v620_v41  ;;  %753 = vrot.lane.b32.xlu1 %v2408_v25, %s2094_s26  ;;  %v2842_v52 = vadd.f32 %v923_v57, %v902_v37  ;;  %v640_v45 = vmul.f32 %v2703_v12, %v619_v3  ;;  %751 = vrot.lane.b32.xlu0 %v2688_v38, %s2094_s26  ;;  %v3843_v37 = vrot.slane %v2544_v31, 1 }
  0xff   : > { %v2853_v28 = vadd.f32 %v922_v0, %v901_v13  ;;  %v702_v57 = vmul.f32 %v2701_v62, %v2446_v34 }
 0x100   : > { %v2857_v39 = vadd.f32 %v694_v9, %v641_v27  ;;  %v592_v20 = vpop.permute.xlu1 %591  ;;  %v2865_v6 = vadd.f32 %v693_v14, %v640_v45  ;;  %v590_v46 = vpop.permute.xlu0 %589  ;;  %v2888_v54 = vsel %vm1047_vm1, %v3843_v37, %v1044_v35  ;;  %v293_v14 = vadd.s32 8, %v2325_v1  ;;  %v2908_v35 = vld [vmem:[#allocation5 + $0x5] ss:$0 sm:$0xff] }
 0x101   : > { %v628_v48 = vsel %vm534_vm2, %v592_v20, 0.0  ;;  %v627_v34 = vsel %vm611_vm13, %v590_v46, 0.0  ;;  %v301_v27 = vadd.s32 72, %v2325_v1 }
 0x102   : > { %v649_v33 = vmul.f32 %v2703_v12, %v628_v48  ;;  %1074 = vrot.lane.b32.xlu1 %v2840_v30, %s2093_s24  ;;  %v648_v8 = vmul.f32 %v2703_v12, %v627_v34  ;;  %1072 = vrot.lane.b32.xlu0 %v2863_v10, %s2093_s24  ;;  %v321_v31 = vand.u32 15, %v293_v14 }
 0x103   : > { %v377_v15 = vand.u32 15, %v301_v27 }
 0x104   : > { %v2882_v0 = vadd.f32 %v702_v57, %v649_v33  ;;  %v949_v9 = vpop.permute.xlu1 %948  ;;  %v2890_v13 = vadd.f32 %v701_v21, %v648_v8  ;;  %v947_v41 = vpop.permute.xlu0 %946  ;;  %vm2914_vm14 = vcmp.lt.s32.totalorder %v321_v31, 15  ;;  %v2924_v33 = vld [vmem:[#allocation5 + $0x7] ss:$0 sm:$0xff] }
 0x105   : > { %v979_v57 = vsel %vm535_vm4, %v949_v9, 0.0  ;;  %v978_v48 = vsel %vm535_vm4, %v947_v41, 0.0  ;;  %vm1097_vm15 = vmand %vm2914_vm14, %vm534_vm2  ;;  %v1166_v8 = vsel %vm2914_vm14, %v2480_v47, 0.0  ;;  %v2941_v41 = vld [vmem:[#allocation5 + $0x6] ss:$0 sm:$0xff]  ;;  %vm2943_vm0 = vcmp.lt.s32.totalorder %v377_v15, 15 }
 0x106   : > { %1090 = vrot.lane.b32.xlu1 %v2880_v17, %s2093_s24  ;;  %1088 = vrot.lane.b32.xlu0 %v2888_v54, %s2093_s24  ;;  %v1000_v34 = vmul.f32 %v2908_v35, %v979_v57  ;;  %v999_v9 = vmul.f32 %v2908_v35, %v978_v48  ;;  %v1187_v47 = vmul.f32 %v2924_v33, %v1166_v8  ;;  %vm1105_vm3 = vmand %vm2943_vm0, %vm534_vm2 }
 0x107   : > { %vm1251_vm5 = vmand %vm2914_vm14, %vm535_vm4 }
 0x108   : > { %v965_v26 = vpop.permute.xlu1 %964  ;;  %v963_v53 = vpop.permute.xlu0 %962  ;;  %v1016_v49 = vadd.f32 %v1000_v34, %v2806_v59  ;;  %v1015_v59 = vadd.f32 %v999_v9, %v2819_v32  ;;  %vm1259_vm6 = vmand %vm2943_vm0, %vm535_vm4 }
 0x109   : > { %v987_v37 = vsel %vm535_vm4, %v965_v26, 0.0  ;;  %v986_v31 = vsel %vm535_vm4, %v963_v53, 0.0  ;;  %v1174_v26 = vsel %vm2943_vm0, %v2504_v56, 0.0  ;;  %v1186_v56 = vmul.f32 %v2924_v33, %v2486_v51  ;;  %vm3158_vm14 = vmand %vm2791_vm11, %vm535_vm4 }
 0x10a   : > { %838 = vrot.lane.b32.xlu1 %v2328_v2, %s2093_s24  ;;  %836 = vrot.lane.b32.xlu0 %v2381_v18, %s2093_s24  ;;  %v1008_v50 = vmul.f32 %v2908_v35, %v987_v37  ;;  %v1007_v53 = vmul.f32 %v2908_v35, %v986_v31 }
 0x10c   : > { %v2902_v3 = vpop.permute.xlu1 %729  ;;  %v2904_v45 = vpop.permute.xlu0 %727  ;;  %v1024_v5 = vadd.f32 %v1008_v50, %v2842_v52  ;;  %v1023_v9 = vadd.f32 %v1007_v53, %v2853_v28  ;;  %v296_v28 = vadd.s32 32, %v2325_v1 }
 0x10e   : > { %854 = vrot.lane.b32.xlu1 %v2340_v7, %s2093_s24  ;;  %852 = vrot.lane.b32.xlu0 %v2384_v19, %s2093_s24 }
 0x110   : > { %v2920_v21 = vpop.permute.xlu1 %745  ;;  %v2922_v46 = vpop.permute.xlu0 %743 }
 0x112   : > { %1228 = vrot.lane.b32.xlu1 %v2840_v30, %s2094_s26  ;;  %1226 = vrot.lane.b32.xlu0 %v2863_v10, %s2094_s26 }
 0x114   : > { %v1067_v27 = vpop.permute.xlu1 %1066  ;;  %v1065_v48 = vpop.permute.xlu0 %1064 }
 0x115   : > { %v1113_v57 = vsel %vm1097_vm15, %v1067_v27, 0.0  ;;  %v1112_v10 = vsel %vm534_vm2, %v1065_v48, 0.0 }
 0x116   : > { %v1134_v15 = vmul.f32 %v2941_v41, %v1113_v57  ;;  %1244 = vrot.lane.b32.xlu1 %v2880_v17, %s2094_s26  ;;  %v1133_v34 = vmul.f32 %v2941_v41, %v1112_v10  ;;  %1242 = vrot.lane.b32.xlu0 %v2888_v54, %s2094_s26  ;;  %v1195_v57 = vmul.f32 %v2924_v33, %v1174_v26 }
 0x118   : > { %v1150_v8 = vadd.f32 %v1134_v15, %v1016_v49  ;;  %v1083_v37 = vpop.permute.xlu1 %1082  ;;  %v1149_v27 = vadd.f32 %v1133_v34, %v1015_v59  ;;  %v1081_v38 = vpop.permute.xlu0 %1080  ;;  %v1194_v49 = vmul.f32 %v2924_v33, %v2508_v58 }
 0x119   : > { %v1121_v48 = vsel %vm1105_vm3, %v1083_v37, 0.0  ;;  %v1120_v32 = vsel %vm534_vm2, %v1081_v38, 0.0 }
 0x11a   : > { %v1142_v51 = vmul.f32 %v2941_v41, %v1121_v48  ;;  %960 = vrot.lane.b32.xlu1 %v2328_v2, %s2094_s26  ;;  %v1203_v10 = vadd.f32 %v1187_v47, %v1150_v8  ;;  %v1141_v31 = vmul.f32 %v2941_v41, %v1120_v32  ;;  %958 = vrot.lane.b32.xlu0 %v2381_v18, %s2094_s26  ;;  %v304_v8 = vadd.s32 96, %v2325_v1 }
 0x11b   : > { %v1202_v50 = vadd.f32 %v1186_v56, %v1149_v27  ;;  %v3848_v56 = vrot.slane %v2328_v2, 1  ;;  %v3013_v2 = vld [vmem:[#allocation5 + $0x8] ss:$0 sm:$0xff]  ;;  %v3851_v27 = vrot.slane %v2340_v7, 1 }
 0x11c   : > { %v1158_v52 = vadd.f32 %v1142_v51, %v1024_v5  ;;  %v2984_v26 = vpop.permute.xlu1 %830  ;;  %v1157_v15 = vadd.f32 %v1141_v31, %v1023_v9  ;;  %v2986_v38 = vpop.permute.xlu0 %828  ;;  %v3849_v5 = vrot.slane %v2381_v18, 1  ;;  %v342_v18 = vand.u32 15, %v296_v28 }
 0x11d   : > { %v398_v31 = vand.u32 15, %v304_v8 }
 0x11e   : > { %976 = vrot.lane.b32.xlu1 %v2340_v7, %s2094_s26  ;;  %v1211_v47 = vadd.f32 %v1195_v57, %v1158_v52  ;;  %974 = vrot.lane.b32.xlu0 %v2384_v19, %s2094_s26  ;;  %v1210_v58 = vadd.f32 %v1194_v49, %v1157_v15  ;;  %v3001_v53 = vsel %vm1047_vm1, %v3849_v5, %v3848_v56  ;;  %v3852_v57 = vrot.slane %v2384_v19, 1  ;;  %v3036_v7 = vld [vmem:[%s3777_s2] ss:$0 sm:$0xff] }
 0x11f   : > { %3850 = vst [vmem:[#allocation22_spill] sm:$0xff] %v3001_v53  ;;  %vm3062_vm8 = vcmp.gt.s32.totalorder %v398_v31, 0 }
 0x120   : > { %v2993_v59 = vpop.permute.xlu1 %846  ;;  %v3003_v34 = vpop.permute.xlu0 %844  ;;  %v3022_v48 = vsel %vm1047_vm1, %v3852_v57, %v3851_v27  ;;  %vm3041_vm1 = vcmp.gt.s32.totalorder %v342_v18, 0  ;;  %v682_v31 = vsel %vm3062_vm8, %v2577_v42, 0.0  ;;  %vm613_vm9 = vmand %vm3062_vm8, %vm534_vm2 }
 0x121   : > { %3853 = vst [vmem:[#allocation23_spill] sm:$0xff] %v3022_v48  ;;  %v674_v18 = vsel %vm3041_vm1, %v2563_v40, 0.0  ;;  %vm605_vm7 = vmand %vm3041_vm1, %vm534_vm2  ;;  %v703_v42 = vmul.f32 %v2701_v62, %v682_v31 }
 0x122   : > { %1078 = vrot.lane.b32.xlu1 %v2496_v55, %s2093_s24  ;;  %1076 = vrot.lane.b32.xlu0 %v3001_v53, %s2093_s24 }
 0x124   : > { %v1221_v37 = vpop.permute.xlu1 %1220  ;;  %v1219_v20 = vpop.permute.xlu0 %1218 }
 0x125   : > { %v1267_v51 = vsel %vm1251_vm5, %v1221_v37, 0.0  ;;  %v1266_v49 = vsel %vm535_vm4, %v1219_v20, 0.0  ;;  %vm3299_vm5 = vmand %vm3041_vm1, %vm535_vm4 }
 0x126   : > { %v1288_v32 = vmul.f32 %v3013_v2, %v1267_v51  ;;  %1094 = vrot.lane.b32.xlu1 %v2517_v61, %s2093_s24  ;;  %v1287_v19 = vmul.f32 %v3013_v2, %v1266_v49  ;;  %1092 = vrot.lane.b32.xlu0 %v3022_v48, %s2093_s24 }
 0x128   : > { %v1304_v52 = vadd.f32 %v1288_v32, %v1203_v10  ;;  %v1237_v15 = vpop.permute.xlu1 %1236  ;;  %v1303_v28 = vadd.f32 %v1287_v19, %v1202_v50  ;;  %v1235_v56 = vpop.permute.xlu0 %1234  ;;  %v695_v32 = vmul.f32 %v2701_v62, %v674_v18 }
 0x129   : > { %v1275_v14 = vsel %vm1259_vm6, %v1237_v15, 0.0  ;;  %v1274_v27 = vsel %vm535_vm4, %v1235_v56, 0.0 }
 0x12a   : > { %v1327_v5 = vadd.f32 %v3036_v7, %v1304_v52  ;;  %v1296_v37 = vmul.f32 %v3013_v2, %v1275_v14  ;;  %1232 = vrot.lane.b32.xlu1 %v2496_v55, %s2094_s26  ;;  %v1326_v10 = vadd.f32 %v3036_v7, %v1303_v28  ;;  %v1295_v50 = vmul.f32 %v3013_v2, %v1274_v27 }
 0x12b   : > { %1230 = vrot.lane.b32.xlu0 %v3001_v53, %s2094_s26 }
 0x12c   : > { %v1312_v57 = vadd.f32 %v1296_v37, %v1211_v47  ;;  %v3066_v51 = vpop.permute.xlu1 %579  ;;  %v1343_v40 = vmax.f32 %v1327_v5, 0.0  ;;  %v1311_v20 = vadd.f32 %v1295_v50, %v1210_v58  ;;  %v578_v49 = vpop.permute.xlu0 %577  ;;  %v1342_v19 = vmax.f32 %v1326_v10, 0.0 }
 0x12d   : > { %v621_v15 = vsel %vm605_vm7, %v578_v49, 0.0  ;;  %v3858_v10 = vmov 0   ;;  %vm3335_vm7 = vmand %vm3062_vm8, %vm535_vm4 }
 0x12e   : > { %v1335_v52 = vadd.f32 %v3036_v7, %v1312_v57  ;;  %1248 = vrot.lane.b32.xlu1 %v2517_v61, %s2094_s26  ;;  %v1334_v47 = vadd.f32 %v3036_v7, %v1311_v20  ;;  %v642_v28 = vmul.f32 %v2703_v12, %v621_v15  ;;  %v1358_v58 = vpack.c.bf16 %v1343_v40, %v1342_v19 }
 0x12f   : > { %1246 = vrot.lane.b32.xlu0 %v3022_v48, %s2094_s26  ;;  %v295_v19 = vadd.s32 24, %v2325_v1  ;;  %v859_v15 = vsel %vm534_vm2, %v2984_v26, 0.0 }
 0x130   : > { %v3083_v14 = vpop.permute.xlu1 %595  ;;  %v1351_v56 = vmax.f32 %v1335_v52, 0.0  ;;  %v3085_v5 = vadd.f32 %v695_v32, %v642_v28  ;;  %v594_v37 = vpop.permute.xlu0 %593  ;;  %1507 = vmatmul.mubr.bf16.vlgmr.msra.gmra.mrb[0].mxu0 %v1358_v58  ;;  %v1350_v27 = vmax.f32 %v1334_v47, 0.0  ;;  %v774_v32 = vsel %vm535_vm4, %v2902_v3, 0.0 }
 0x131   : > { %v629_v18 = vsel %vm613_vm9, %v594_v37, 0.0  ;;  %1516 = vmatprep.mubr.bf16.mxu0 %v3858_v10  ;;  %v795_v47 = vmul.f32 %v2725_v63, %v774_v32  ;;  %v782_v28 = vsel %vm535_vm4, %v2920_v21, 0.0  ;;  %v335_v58 = vand.u32 15, %v295_v19 }
 0x132   : > { %v650_v50 = vmul.f32 %v2703_v12, %v629_v18  ;;  %v1362_v57 = vpack.c.bf16 %v1351_v56, %v1350_v27  ;;  %v303_v56 = vadd.s32 88, %v2325_v1  ;;  %v880_v3 = vmul.f32 %v2764_v60, %v859_v15 }
 0x133   : > { %v867_v37 = vsel %vm534_vm2, %v2993_v59, 0.0  ;;  %v811_v27 = vadd.f32 %v795_v47, %v2857_v39  ;;  %v803_v18 = vmul.f32 %v2725_v63, %v782_v28  ;;  %vm3127_vm13 = vcmp.lt.s32.totalorder %v335_v58, 15 }
 0x134   : > { %v953_v20 = vpop.permute.xlu1 %952  ;;  %v3090_v49 = vadd.f32 %v703_v42, %v650_v50  ;;  %1547 = vmatmul.mubr.bf16.vlgmr.msra.gmra.mrb[0].mxu1 %v1362_v57  ;;  %v951_v40 = vpop.permute.xlu0 %950  ;;  %v391_v59 = vand.u32 15, %v303_v56  ;;  %v888_v39 = vmul.f32 %v2764_v60, %v867_v37  ;;  %v917_v19 = vmul.f32 %v2731_v16, %v2396_v23  ;;  %vm3147_vm10 = vmand %vm3127_vm13, %vm534_vm2  ;;  %v3873_v57 = vld [vmem:[#allocation18_spill] sm:$0xff] }
 0x135   : > { %1556 = vmatprep.mubr.bf16.mxu1 %v3858_v10  ;;  %v981_v50 = vsel %vm535_vm4, %v953_v20, 0.0  ;;  %v896_v32 = vadd.f32 %v880_v3, %v811_v27  ;;  %v773_v47 = vsel %vm3121_vm12, %v2904_v45, 0.0  ;;  %v819_v20 = vadd.f32 %v803_v18, %v2882_v0  ;;  %vm1253_vm0 = vmand %vm3127_vm13, %vm535_vm4 }
 0x136   : > { %v1002_v28 = vmul.f32 %v2908_v35, %v981_v50  ;;  %v1168_v23 = vsel %vm3127_vm13, %v2605_v44, 0.0  ;;  %vm3164_vm15 = vcmp.lt.s32.totalorder %v391_v59, 15  ;;  %v858_v3 = vsel %vm534_vm2, %v2986_v38, 0.0  ;;  %v3869_v59 = vld [vmem:[#allocation17_spill] sm:$0xff] }
 0x137   : > { %v904_v44 = vadd.f32 %v888_v39, %v819_v20  ;;  %v933_v37 = vadd.f32 %v917_v19, %v896_v32  ;;  %v794_v18 = vmul.f32 %v2725_v63, %v773_v47  ;;  %v1189_v21 = vmul.f32 %v2924_v33, %v1168_v23  ;;  %vm1107_vm11 = vmand %vm3164_vm15, %vm534_vm2 }
 0x138   : > { %v969_v52 = vpop.permute.xlu1 %968  ;;  %v3100_v31 = vpop.permute.xlu0 %966  ;;  %v1176_v48 = vsel %vm3164_vm15, %v3869_v59, 0.0  ;;  %v781_v38 = vsel %vm3158_vm14, %v2922_v46, 0.0  ;;  %v879_v19 = vmul.f32 %v2764_v60, %v858_v3  ;;  %v866_v47 = vsel %vm534_vm2, %v3003_v34, 0.0  ;;  %vm1261_vm3 = vmand %vm3164_vm15, %vm535_vm4 }
 0x139   : > { %v989_v45 = vsel %vm535_vm4, %v969_v52, 0.0  ;;  %v1018_v32 = vadd.f32 %v1002_v28, %v933_v37  ;;  %v941_v20 = vadd.f32 %v925_v22, %v904_v44  ;;  %v810_v46 = vadd.f32 %v794_v18, %v2865_v6  ;;  %v3870_v44 = vld [vmem:[#allocation12_spill] sm:$0xff] }
 0x13a   : > { %v1010_v29 = vmul.f32 %v2908_v35, %v989_v45  ;;  %v802_v28 = vmul.f32 %v2725_v63, %v781_v38  ;;  %v1197_v0 = vmul.f32 %v2924_v33, %v1176_v48  ;;  %v887_v34 = vmul.f32 %v2764_v60, %v866_v47  ;;  %v3871_v47 = vld [vmem:[#allocation13_spill] sm:$0xff] }
 0x13b   : > { %v895_v53 = vadd.f32 %v879_v19, %v810_v46  ;;  %v916_v22 = vmul.f32 %v2731_v16, %v3870_v44 }
 0x13c   : > { %v3108_v42 = vpop.permute.xlu1 %733  ;;  %v3113_v26 = vpop.permute.xlu0 %731  ;;  %v818_v38 = vadd.f32 %v802_v28, %v2890_v13 }
 0x13d   : > { %v932_v19 = vadd.f32 %v916_v22, %v895_v53  ;;  %v3872_v53 = vld [vmem:[#allocation16_spill] sm:$0xff] }
 0x140   : > { %v3134_v15 = vpop.permute.xlu1 %749  ;;  %v3136_v4 = vpop.permute.xlu0 %747 }
 0x144   : > { %v1071_v27 = vpop.permute.xlu1 %1070  ;;  %v1069_v50 = vpop.permute.xlu0 %1068 }
 0x145   : > { %v1115_v52 = vsel %vm3147_vm10, %v1071_v27, 0.0  ;;  %v980_v27 = vsel %vm535_vm4, %v951_v40, 0.0  ;;  %v1114_v6 = vsel %vm534_vm2, %v1069_v50, 0.0 }
 0x146   : > { %v1136_v39 = vmul.f32 %v2941_v41, %v1115_v52  ;;  %v1026_v52 = vadd.f32 %v1010_v29, %v941_v20  ;;  %v1001_v40 = vmul.f32 %v2908_v35, %v980_v27  ;;  %v924_v20 = vmul.f32 %v2731_v16, %v3871_v47 }
 0x147   : > { %v1135_v50 = vmul.f32 %v2941_v41, %v1114_v6  ;;  %v1196_v6 = vmul.f32 %v2924_v33, %v3873_v57 }
 0x148   : > { %v1152_v58 = vadd.f32 %v1136_v39, %v1018_v32  ;;  %v1087_v23 = vpop.permute.xlu1 %1086  ;;  %v1085_v37 = vpop.permute.xlu0 %1084  ;;  %v903_v39 = vadd.f32 %v887_v34, %v818_v38 }
 0x149   : > { %v1123_v45 = vsel %vm1107_vm11, %v1087_v23, 0.0  ;;  %v1017_v23 = vadd.f32 %v1001_v40, %v932_v19 }
 0x14a   : > { %v1144_v3 = vmul.f32 %v2941_v41, %v1123_v45  ;;  %v1205_v59 = vadd.f32 %v1189_v21, %v1152_v58  ;;  %v988_v21 = vsel %vm535_vm4, %v3100_v31, 0.0  ;;  %v1122_v58 = vsel %vm534_vm2, %v1085_v37, 0.0 }
 0x14b   : > { %v1009_v46 = vmul.f32 %v2908_v35, %v988_v21  ;;  %v1188_v31 = vmul.f32 %v2924_v33, %v3872_v53  ;;  %v1151_v45 = vadd.f32 %v1135_v50, %v1017_v23  ;;  %v1143_v27 = vmul.f32 %v2941_v41, %v1122_v58 }
 0x14c   : > { %v1160_v18 = vadd.f32 %v1144_v3, %v1026_v52  ;;  %v3204_v48 = vpop.permute.xlu1 %834  ;;  %v3208_v32 = vpop.permute.xlu0 %832 }
 0x14d   : > { %v1204_v38 = vadd.f32 %v1188_v31, %v1151_v45 }
 0x14e   : > { %v1213_v29 = vadd.f32 %v1197_v0, %v1160_v18  ;;  %v940_v0 = vadd.f32 %v924_v20, %v903_v39 }
 0x150   : > { %v3218_v13 = vpop.permute.xlu1 %850  ;;  %v3221_v28 = vpop.permute.xlu0 %848  ;;  %v1025_v52 = vadd.f32 %v1009_v46, %v940_v0 }
 0x152   : > { %v1159_v18 = vadd.f32 %v1143_v27, %v1025_v52 }
 0x154   : > { %v1225_v37 = vpop.permute.xlu1 %1224  ;;  %v1223_v34 = vpop.permute.xlu0 %1222  ;;  %v1212_v46 = vadd.f32 %v1196_v6, %v1159_v18 }
 0x155   : > { %v1269_v3 = vsel %vm1253_vm0, %v1225_v37, 0.0  ;;  %v1268_v22 = vsel %vm535_vm4, %v1223_v34, 0.0 }
 0x156   : > { %v1290_v44 = vmul.f32 %v3013_v2, %v1269_v3  ;;  %v1289_v40 = vmul.f32 %v3013_v2, %v1268_v22 }
 0x158   : > { %v1306_v21 = vadd.f32 %v1290_v44, %v1205_v59  ;;  %v1241_v39 = vpop.permute.xlu1 %1240  ;;  %v1305_v19 = vadd.f32 %v1289_v40, %v1204_v38  ;;  %v1239_v20 = vpop.permute.xlu0 %1238  ;;  %v622_v38 = vsel %vm534_vm2, %v3066_v51, 0.0  ;;  %v630_v51 = vsel %vm534_vm2, %v3083_v14, 0.0 }
 0x159   : > { %v1277_v47 = vsel %vm1261_vm3, %v1241_v39, 0.0  ;;  %v1276_v56 = vsel %vm535_vm4, %v1239_v20, 0.0  ;;  %v297_v39 = vadd.s32 40, %v2325_v1  ;;  %v643_v20 = vmul.f32 %v2703_v12, %v622_v38 }
 0x15a   : > { %v1329_v50 = vadd.f32 %v3036_v7, %v1306_v21  ;;  %v1298_v58 = vmul.f32 %v3013_v2, %v1277_v47  ;;  %v1328_v23 = vadd.f32 %v3036_v7, %v1305_v19  ;;  %v1297_v53 = vmul.f32 %v3013_v2, %v1276_v56  ;;  %v3874_v19 = vld [vmem:[#allocation14_spill] sm:$0xff] }
 0x15b   : > { %v776_v21 = vsel %vm535_vm4, %v3108_v42, 0.0  ;;  %v696_v47 = vmul.f32 %v2701_v62, %v3874_v19  ;;  %v651_v14 = vmul.f32 %v2703_v12, %v630_v51  ;;  %v919_v19 = vmul.f32 %v2731_v16, %v2533_v11 }
 0x15c   : > { %v1314_v31 = vadd.f32 %v1298_v58, %v1213_v29  ;;  %v3246_v0 = vpop.permute.xlu1 %583  ;;  %v1345_v59 = vmax.f32 %v1329_v50, 0.0  ;;  %v1313_v45 = vadd.f32 %v1297_v53, %v1212_v46  ;;  %v3248_v27 = vpop.permute.xlu0 %581  ;;  %v1344_v37 = vmax.f32 %v1328_v23, 0.0 }
 0x15d   : > { %v861_v58 = vsel %vm534_vm2, %v3204_v48, 0.0  ;;  %v797_v42 = vmul.f32 %v2725_v63, %v776_v21  ;;  %v784_v23 = vsel %vm535_vm4, %v3134_v15, 0.0  ;;  %v349_v46 = vand.u32 15, %v297_v39 }
 0x15e   : > { %v1337_v52 = vadd.f32 %v3036_v7, %v1314_v31  ;;  %v1336_v3 = vadd.f32 %v3036_v7, %v1313_v45  ;;  %v1359_v34 = vpack.c.bf16 %v1345_v59, %v1344_v37  ;;  %v305_v53 = vadd.s32 104, %v2325_v1  ;;  %v3875_v31 = vld [vmem:[#allocation15_spill] sm:$0xff] }
 0x15f   : > { %v704_v59 = vmul.f32 %v2701_v62, %v3875_v31  ;;  %v712_v45 = vadd.f32 %v696_v47, %v643_v20  ;;  %v882_v37 = vmul.f32 %v2764_v60, %v861_v58  ;;  %vm3305_vm6 = vcmp.lt.s32.totalorder %v349_v46, 15 }
 0x160   : > { %v3252_v44 = vpop.permute.xlu1 %599  ;;  %v1353_v22 = vmax.f32 %v1337_v52, 0.0  ;;  %v3254_v57 = vpop.permute.xlu0 %597  ;;  %1517 = vmatmul.mubr.bf16.gmra.mrb[4].mxu0 %v1359_v34  ;;  %v1352_v6 = vmax.f32 %v1336_v3, 0.0  ;;  %v869_v52 = vsel %vm534_vm2, %v3218_v13, 0.0  ;;  %v805_v34 = vmul.f32 %v2725_v63, %v784_v23  ;;  %vm3324_vm1 = vmand %vm3305_vm6, %vm534_vm2 }
 0x161   : > { %1526 = vmatprep.mubr.bf16.mxu0 %v3858_v10  ;;  %v813_v15 = vadd.f32 %v797_v42, %v712_v45  ;;  %v405_v13 = vand.u32 15, %v305_v53  ;;  %v720_v38 = vadd.f32 %v704_v59, %v651_v14  ;;  %v890_v39 = vmul.f32 %v2764_v60, %v869_v52  ;;  %vm3450_vm14 = vmand %vm3305_vm6, %vm535_vm4 }
 0x162   : > { %v1363_v29 = vpack.c.bf16 %v1353_v22, %v1352_v6  ;;  %v1170_v11 = vsel %vm3305_vm6, %v2840_v30, 0.0  ;;  %v298_v42 = vadd.s32 48, %v2325_v1  ;;  %v927_v23 = vmul.f32 %v2731_v16, %v2547_v36 }
 0x163   : > { %v898_v21 = vadd.f32 %v882_v37, %v813_v15  ;;  %v821_v20 = vadd.f32 %v805_v34, %v720_v38  ;;  %vm3344_vm9 = vcmp.lt.s32.totalorder %v405_v13, 15  ;;  %v860_v30 = vsel %vm534_vm2, %v3208_v32, 0.0 }
 0x164   : > { %v957_v18 = vpop.permute.xlu1 %956  ;;  %1557 = vmatmul.mubr.bf16.gmra.mrb[4].mxu1 %v1363_v29  ;;  %v3260_v40 = vpop.permute.xlu0 %954  ;;  %v306_v31 = vadd.s32 112, %v2325_v1  ;;  %v1191_v36 = vmul.f32 %v2924_v33, %v1170_v11  ;;  %v1178_v52 = vsel %vm3344_vm9, %v2880_v17, 0.0  ;;  %v783_v32 = vsel %vm3335_vm7, %v3136_v4, 0.0  ;;  %vm1109_vm8 = vmand %vm3344_vm9, %vm534_vm2 }
 0x165   : > { %1566 = vmatprep.mubr.bf16.mxu1 %v3858_v10  ;;  %v983_v6 = vsel %vm535_vm4, %v957_v18, 0.0  ;;  %v775_v18 = vsel %vm3299_vm5, %v3113_v26, 0.0  ;;  %v906_v8 = vadd.f32 %v890_v39, %v821_v20  ;;  %v935_v59 = vadd.f32 %v919_v19, %v898_v21  ;;  %vm3504_vm0 = vmand %vm3344_vm9, %vm535_vm4 }
 0x166   : > { %v1004_v51 = vmul.f32 %v2908_v35, %v983_v6  ;;  %v796_v14 = vmul.f32 %v2725_v63, %v775_v18  ;;  %v881_v6 = vmul.f32 %v2764_v60, %v860_v30  ;;  %v356_v13 = vand.u32 15, %v298_v42 }
 0x167   : > { %v868_v17 = vsel %vm534_vm2, %v3221_v28, 0.0  ;;  %v412_v38 = vand.u32 15, %v306_v31  ;;  %v943_v4 = vadd.f32 %v927_v23, %v906_v8  ;;  %v804_v18 = vmul.f32 %v2725_v63, %v783_v32  ;;  %v1920_v63 = vld [vmem:[%s2314_s9 + $0x20] sm:$0xff] }
 0x168   : > { %v973_v50 = vpop.permute.xlu1 %972  ;;  %v3276_v56 = vpop.permute.xlu0 %970  ;;  %v1020_v15 = vadd.f32 %v1004_v51, %v935_v59  ;;  %v812_v19 = vadd.f32 %v796_v14, %v3085_v5  ;;  %v1199_v20 = vmul.f32 %v2924_v33, %v1178_v52  ;;  %v982_v11 = vsel %vm535_vm4, %v3260_v40, 0.0 }
 0x169   : > { %v991_v46 = vsel %vm535_vm4, %v973_v50, 0.0  ;;  %vm3382_vm12 = vcmp.gt.s32.totalorder %v356_v13, 0  ;;  %v918_v30 = vmul.f32 %v1920_v63, %v2731_v16  ;;  %v698_v59 = vmul.f32 %v2701_v62, %v2402_v24 }
 0x16a   : > { %v1012_v34 = vmul.f32 %v2908_v35, %v991_v46  ;;  %v897_v23 = vadd.f32 %v881_v6, %v812_v19  ;;  %v889_v46 = vmul.f32 %v2764_v60, %v868_v17  ;;  %v1003_v14 = vmul.f32 %v2908_v35, %v982_v11  ;;  %vm3402_vm13 = vmand %vm3382_vm12, %vm534_vm2  ;;  %v3893_v19 = vld [vmem:[#allocation20_spill] sm:$0xff] }
 0x16b   : > { %vm3406_vm10 = vcmp.gt.s32.totalorder %v412_v38, 0  ;;  %v990_v24 = vsel %vm535_vm4, %v3276_v56, 0.0  ;;  %v299_v52 = vadd.s32 56, %v2325_v1  ;;  %v3421_v13 = vmul.f32 %v2701_v62, %v2408_v25  ;;  %v3892_v56 = vld [vmem:[#allocation19_spill] sm:$0xff]  ;;  %vm3480_vm11 = vmand %vm3382_vm12, %vm535_vm4 }
 0x16c   : > { %v3287_v48 = vpop.permute.xlu1 %737  ;;  %v3292_v3 = vpop.permute.xlu0 %735  ;;  %v1028_v26 = vadd.f32 %v1012_v34, %v943_v4  ;;  %v1921_v34 = vld [vmem:[%s2314_s9 + $0x60] sm:$0xff]  ;;  %v624_v17 = vsel %vm534_vm2, %v3246_v0, 0.0  ;;  %v676_v38 = vsel %vm3382_vm12, %v3892_v56, 0.0  ;;  %v684_v25 = vsel %vm3406_vm10, %v3893_v19, 0.0  ;;  %vm3465_vm15 = vmand %vm3406_vm10, %vm534_vm2 }
 0x16d   : > { %v1011_v0 = vmul.f32 %v2908_v35, %v990_v24  ;;  %v778_v5 = vsel %vm535_vm4, %v3287_v48, 0.0  ;;  %v632_v53 = vsel %vm534_vm2, %v3252_v44, 0.0  ;;  %vm3530_vm5 = vmand %vm3406_vm10, %vm535_vm4 }
 0x170   : > { %v3312_v9 = vpop.permute.xlu1 %753  ;;  %v3314_v47 = vpop.permute.xlu0 %751 }
 0x174   : > { %v1075_v45 = vpop.permute.xlu1 %1074  ;;  %v1073_v37 = vpop.permute.xlu0 %1072 }
 0x175   : > { %v1117_v50 = vsel %vm3324_vm1, %v1075_v45, 0.0  ;;  %v1116_v8 = vsel %vm534_vm2, %v1073_v37, 0.0  ;;  %v820_v45 = vadd.f32 %v804_v18, %v3090_v49 }
 0x176   : > { %v1138_v22 = vmul.f32 %v2941_v41, %v1117_v50  ;;  %v1137_v6 = vmul.f32 %v2941_v41, %v1116_v8  ;;  %v786_v8 = vsel %vm535_vm4, %v3312_v9, 0.0 }
 0x177   : > { %v905_v32 = vadd.f32 %v889_v46, %v820_v45 }
 0x178   : > { %v1154_v21 = vadd.f32 %v1138_v22, %v1020_v15  ;;  %v1091_v39 = vpop.permute.xlu1 %1090  ;;  %v1089_v58 = vpop.permute.xlu0 %1088  ;;  %v934_v15 = vadd.f32 %v918_v30, %v897_v23  ;;  %v926_v22 = vmul.f32 %v1921_v34, %v2731_v16  ;;  %v645_v23 = vmul.f32 %v2703_v12, %v624_v17  ;;  %v1924_v34 = vld [vmem:[%s2314_s9 + $0x78] sm:$0xff] }
 0x179   : > { %v1125_v51 = vsel %vm1109_vm8, %v1091_v39, 0.0  ;;  %v1124_v4 = vsel %vm534_vm2, %v1089_v58, 0.0  ;;  %v623_v39 = vsel %vm3402_vm13, %v3248_v27, 0.0  ;;  %v1198_v58 = vmul.f32 %v2924_v33, %v2888_v54 }
 0x17a   : > { %v1146_v28 = vmul.f32 %v2941_v41, %v1125_v51  ;;  %v3379_v42 = vadd.f32 %v1191_v36, %v1154_v21  ;;  %v1019_v18 = vadd.f32 %v1003_v14, %v934_v15  ;;  %v3894_v51 = vld [vmem:[#allocation21_spill] sm:$0xff]  ;;  %v942_v46 = vadd.f32 %v926_v22, %v905_v32 }
 0x17b   : > { %v1190_v11 = vmul.f32 %v2924_v33, %v3894_v51  ;;  %v1145_v54 = vmul.f32 %v2941_v41, %v1124_v4  ;;  %v697_v30 = vmul.f32 %v2701_v62, %v676_v38  ;;  %v644_v29 = vmul.f32 %v2703_v12, %v623_v39  ;;  %v1922_v14 = vld [vmem:[%s2314_s9 + $0x38] sm:$0xff] }
 0x17c   : > { %v1162_v40 = vadd.f32 %v1146_v28, %v1028_v26  ;;  %v3390_v31 = vpop.permute.xlu1 %838  ;;  %v3396_v36 = vpop.permute.xlu0 %836  ;;  %v363_v26 = vand.u32 15, %v299_v52  ;;  %v3455_v28 = vadd.s32 120, %v2325_v1  ;;  %v1153_v63 = vadd.f32 %v1137_v6, %v1019_v18 }
 0x17d   : > { %v3474_v50 = vmul.f32 %v1922_v14, %v2731_v16  ;;  %v1027_v24 = vadd.f32 %v1011_v0, %v942_v46  ;;  %v3492_v22 = vmul.f32 %v1924_v34, %v2731_v16  ;;  %v714_v38 = vadd.f32 %v698_v59, %v645_v23  ;;  %v1926_v34 = vld [vmem:[#allocation5] ss:$0 sm:$0xff] }
 0x17e   : > { %v3413_v49 = vadd.f32 %v1199_v20, %v1162_v40  ;;  %v3470_v40 = vmul.f32 %v2701_v62, %v684_v25  ;;  %v1923_v62 = vld [vmem:[%s2314_s9 + $0x30] sm:$0xff]  ;;  %v1206_v39 = vadd.f32 %v1190_v11, %v1153_v63  ;;  %vm3510_vm3 = vcmp.lt.s32.totalorder %v363_v26, 15  ;;  %v1925_v11 = vld [vmem:[#allocation5 + $0x2] ss:$0 sm:$0xff] }
 0x17f   : > { %v3488_v15 = vmul.f32 %v1923_v62, %v2731_v16  ;;  %v419_v16 = vand.u32 15, %v3455_v28  ;;  %v1161_v4 = vadd.f32 %v1145_v54, %v1027_v24  ;;  %v713_v25 = vadd.f32 %v697_v30, %v644_v29  ;;  %vm3572_vm6 = vmand %vm3510_vm3, %vm534_vm2 }
 0x180   : > { %v3431_v21 = vpop.permute.xlu1 %854  ;;  %v3440_v20 = vpop.permute.xlu0 %852  ;;  %v777_v18 = vsel %vm3480_vm11, %v3292_v3, 0.0  ;;  %v631_v51 = vsel %vm3465_vm15, %v3254_v57, 0.0  ;;  %v799_v27 = vmul.f32 %v1925_v11, %v778_v5  ;;  %v863_v3 = vsel %vm534_vm2, %v3390_v31, 0.0  ;;  %vm1257_vm9 = vmand %vm3510_vm3, %vm535_vm4 }
 0x181   : > { %v798_v54 = vmul.f32 %v1925_v11, %v777_v18  ;;  %v1214_v29 = vadd.f32 %v1198_v58, %v1161_v4  ;;  %v862_v31 = vsel %vm534_vm2, %v3396_v36, 0.0  ;;  %v785_v12 = vsel %vm3530_vm5, %v3314_v47, 0.0  ;;  %v1927_v36 = vld [vmem:[#allocation5 + $0x3] ss:$0 sm:$0xff] }
 0x182   : > { %v884_v58 = vmul.f32 %v2764_v60, %v863_v3  ;;  %v653_v5 = vmul.f32 %v1926_v34, %v632_v53  ;;  %v652_v9 = vmul.f32 %v1926_v34, %v631_v51  ;;  %v883_v56 = vmul.f32 %v1927_v36, %v862_v31 }
 0x183   : > { %v806_v60 = vmul.f32 %v1925_v11, %v785_v12  ;;  %vm3579_vm1 = vcmp.lt.s32.totalorder %v419_v16, 15  ;;  %v1929_v12 = vld [vmem:[#allocation5 + $0x4] ss:$0 sm:$0xff] }
 0x184   : > { %v1229_v45 = vpop.permute.xlu1 %1228  ;;  %v1227_v32 = vpop.permute.xlu0 %1226  ;;  %vm3602_vm7 = vmand %vm3579_vm1, %vm534_vm2 }
 0x185   : > { %v1271_v52 = vsel %vm3450_vm14, %v1229_v45, 0.0  ;;  %v1270_v17 = vsel %vm535_vm4, %v1227_v32, 0.0 }
 0x186   : > { %v1292_v6 = vmul.f32 %v3013_v2, %v1271_v52  ;;  %v1291_v48 = vmul.f32 %v3013_v2, %v1270_v17 }
 0x188   : > { %v1308_v0 = vadd.f32 %v1292_v6, %v3379_v42  ;;  %v1245_v59 = vpop.permute.xlu1 %1244  ;;  %v1307_v26 = vadd.f32 %v1291_v48, %v1206_v39  ;;  %v1243_v46 = vpop.permute.xlu0 %1242  ;;  %v815_v6 = vadd.f32 %v799_v27, %v714_v38  ;;  %v807_v39 = vmul.f32 %v1925_v11, %v786_v8 }
 0x189   : > { %v1279_v23 = vsel %vm3504_vm0, %v1245_v59, 0.0  ;;  %v1278_v63 = vsel %vm535_vm4, %v1243_v46, 0.0  ;;  %v870_v48 = vsel %vm534_vm2, %v3440_v20, 0.0  ;;  %v814_v38 = vadd.f32 %v798_v54, %v713_v25 }
 0x18a   : > { %v1331_v57 = vadd.f32 %v3036_v7, %v1308_v0  ;;  %v1300_v42 = vmul.f32 %v3013_v2, %v1279_v23  ;;  %v1330_v30 = vadd.f32 %v3036_v7, %v1307_v26  ;;  %v1299_v37 = vmul.f32 %v3013_v2, %v1278_v63 }
 0x18b   : > { %v900_v0 = vadd.f32 %v884_v58, %v815_v6  ;;  %v721_v26 = vadd.f32 %v3470_v40, %v652_v9  ;;  %v899_v25 = vadd.f32 %v883_v56, %v814_v38  ;;  %v891_v46 = vmul.f32 %v1927_v36, %v870_v48 }
 0x18c   : > { %v1316_v45 = vadd.f32 %v1300_v42, %v3413_v49  ;;  %v961_v14 = vpop.permute.xlu1 %960  ;;  %v1347_v24 = vmax.f32 %v1331_v57, 0.0  ;;  %v1315_v52 = vadd.f32 %v1299_v37, %v1214_v29  ;;  %v959_v32 = vpop.permute.xlu0 %958  ;;  %v1346_v62 = vmax.f32 %v1330_v30, 0.0 }
 0x18d   : > { %v871_v49 = vsel %vm534_vm2, %v3431_v21, 0.0  ;;  %v985_v59 = vsel %vm535_vm4, %v961_v14, 0.0  ;;  %v722_v21 = vadd.f32 %v3421_v13, %v653_v5  ;;  %v984_v11 = vsel %vm535_vm4, %v959_v32, 0.0 }
 0x18e   : > { %v1339_v17 = vadd.f32 %v3036_v7, %v1316_v45  ;;  %v1338_v4 = vadd.f32 %v3036_v7, %v1315_v52  ;;  %v1360_v47 = vpack.c.bf16 %v1347_v24, %v1346_v62  ;;  %v892_v23 = vmul.f32 %v1927_v36, %v871_v49  ;;  %v1928_v24 = vld [vmem:[%s2314_s9 + $0x70] sm:$0xff]  ;;  %s2096_s9 = smov [#allocation8]  }
 0x18f   : > { %v823_v40 = vadd.f32 %v807_v39, %v722_v21  ;;  %v822_v3 = vadd.f32 %v806_v60, %v721_v26  ;;  %v1006_v57 = vmul.f32 %v2908_v35, %v985_v59  ;;  %v1172_v42 = vsel %vm3510_vm3, %v2496_v55, 0.0  ;;  %s2020_s24 = sshll.u32 %s2096_s9, 4  ;;  %s2021_s24 = int_to_ptr.vmem [resolvable:$false] %s2020_s24 }
 0x190   : > { %v977_v53 = vpop.permute.xlu1 %976  ;;  %v1355_v18 = vmax.f32 %v1339_v17, 0.0  ;;  %v975_v51 = vpop.permute.xlu0 %974  ;;  %1527 = vmatmul.mubr.bf16.gmra.mrb[8].mxu0 %v1360_v47  ;;  %v1354_v27 = vmax.f32 %v1338_v4, 0.0  ;;  %v937_v54 = vadd.f32 %v3474_v50, %v900_v0  ;;  %v1005_v30 = vmul.f32 %v2908_v35, %v984_v11  ;;  %s2022_s26 = scalar_lea.vmem %s2021_s24, 8192  ;;  %p2023_p7 = scmp.lt.s32.totalorder %s3728_s11, %s2021_s24 }
 0x191   : > { %1536 = vmatprep.mubr.bf16.mxu0 %v3858_v10  ;;  %v993_v28 = vsel %vm535_vm4, %v977_v53, 0.0  ;;  %v908_v37 = vadd.f32 %v892_v23, %v823_v40  ;;  %v992_v8 = vsel %vm535_vm4, %v975_v51, 0.0  ;;  %v907_v45 = vadd.f32 %v891_v46, %v822_v3  ;;  %p2024_p9 = scmp.lt.s32.totalorder %s2022_s26, %s2016_s8 }
 0x192   : > { %v1364_v44 = vpack.c.bf16 %v1355_v18, %v1354_v27  ;;  %v936_v14 = vadd.f32 %v3488_v15, %v899_v25  ;;  %v928_v58 = vmul.f32 %v1929_v12, %v1928_v24  ;;  %v1022_v32 = vadd.f32 %v1006_v57, %v937_v54 }
 0x193   : > { %v1014_v62 = vmul.f32 %v2908_v35, %v993_v28  ;;  %v1193_v34 = vmul.f32 %v2924_v33, %v1172_v42  ;;  %v1013_v6 = vmul.f32 %v2908_v35, %v992_v8  ;;  %v945_v36 = vadd.f32 %v3492_v22, %v908_v37  ;;  %v3913_v35 = vld [vmem:[#allocation22_spill] sm:$0xff]  ;;  %p2025_p12 = por %p2024_p9, %p2023_p7 }
 0x194   : > { %v1079_v63 = vpop.permute.xlu1 %1078  ;;  %1567 = vmatmul.mubr.bf16.gmra.mrb[8].mxu1 %v1364_v44  ;;  %v1077_v29 = vpop.permute.xlu0 %1076  ;;  %v1021_v9 = vadd.f32 %v1005_v30, %v936_v14  ;;  %v944_v47 = vadd.f32 %v928_v58, %v907_v45  ;;  %v1386_v45 = vsub.s32 0, %v2325_v1  ;;  %v1390_v14 = vsub.s32 1, %v2325_v1 }
 0x195   : > { %v1119_v16 = vsel %vm3572_vm6, %v1079_v63, 0.0  ;;  %v1118_v31 = vsel %vm534_vm2, %v1077_v29, 0.0  ;;  %1576 = vmatprep.mubr.bf16.mxu1 %v3858_v10  ;;  %v1180_v10 = vsel %vm3579_vm1, %v2517_v61, 0.0  ;;  %v1192_v61 = vmul.f32 %v2924_v33, %v3913_v35  ;;  %p2026_p1 = pnand %p2025_p12, %p2019_p3 }
 0x196   : > { %v1140_v55 = vmul.f32 %v2941_v41, %v1119_v16  ;;  %v1139_v52 = vmul.f32 %v2941_v41, %v1118_v31  ;;  %v1030_v48 = vadd.f32 %v1014_v62, %v945_v36  ;;  %v1029_v53 = vadd.f32 %v1013_v6, %v944_v47 }
 0x197   : > { %v1201_v18 = vmul.f32 %v2924_v33, %v1180_v10 }
 0x198   : > { %v1095_v5 = vpop.permute.xlu1 %1094  ;;  %v1093_v17 = vpop.permute.xlu0 %1092  ;;  %v1156_v56 = vadd.f32 %v1140_v55, %v1022_v32  ;;  %v1155_v39 = vadd.f32 %v1139_v52, %v1021_v9 }
 0x199   : > { %v1127_v15 = vsel %vm3602_vm7, %v1095_v5, 0.0  ;;  %v1126_v4 = vsel %vm534_vm2, %v1093_v17, 0.0  ;;  %vm1265_vm2 = vmand %vm3579_vm1, %vm535_vm4 }
 0x19a   : > { %v1148_v49 = vmul.f32 %v2941_v41, %v1127_v15  ;;  %v1147_v60 = vmul.f32 %v2941_v41, %v1126_v4  ;;  %v1209_v51 = vadd.f32 %v1193_v34, %v1156_v56  ;;  %v3914_v41 = vld [vmem:[#allocation23_spill] sm:$0xff]  ;;  %v1208_v23 = vadd.f32 %v1192_v61, %v1155_v39 }
 0x19b   : > { %v1200_v21 = vmul.f32 %v2924_v33, %v3914_v41 }
 0x19c   : > { %v1233_v22 = vpop.permute.xlu1 %1232  ;;  %v1164_v59 = vadd.f32 %v1148_v49, %v1030_v48  ;;  %v1163_v26 = vadd.f32 %v1147_v60, %v1029_v53 }
 0x19d   : > { %v1273_v38 = vsel %vm1257_vm9, %v1233_v22, 0.0  ;;  %v1231_v0 = vpop.permute.xlu0 %1230 }
 0x19e   : > { %v1294_v27 = vmul.f32 %v3013_v2, %v1273_v38  ;;  %v1272_v19 = vsel %vm535_vm4, %v1231_v0, 0.0  ;;  %v1217_v57 = vadd.f32 %v1201_v18, %v1164_v59  ;;  %v1216_v33 = vadd.f32 %v1200_v21, %v1163_v26 }
 0x19f   : > { %v1293_v11 = vmul.f32 %v3013_v2, %v1272_v19 }
 0x1a0   : > { %v1310_v20 = vadd.f32 %v1294_v27, %v1209_v51  ;;  %v1249_v25 = vpop.permute.xlu1 %1248 }
 0x1a1   : > { %v1309_v46 = vadd.f32 %v1293_v11, %v1208_v23  ;;  %v1281_v44 = vsel %vm1265_vm2, %v1249_v25, 0.0  ;;  %v1247_v40 = vpop.permute.xlu0 %1246 }
 0x1a2   : > { %v1333_v3 = vadd.f32 %v3036_v7, %v1310_v20  ;;  %v1302_v42 = vmul.f32 %v3013_v2, %v1281_v44  ;;  %v1280_v13 = vsel %vm535_vm4, %v1247_v40, 0.0 }
 0x1a3   : > { %v1332_v63 = vadd.f32 %v3036_v7, %v1309_v46  ;;  %v1301_v54 = vmul.f32 %v3013_v2, %v1280_v13  ;;  %v1382_v2 = vld [vmem:[%s3779_s4] sm:$0x3] }
 0x1a4   : > { %v1318_v30 = vadd.f32 %v1302_v42, %v1217_v57  ;;  %v1349_v28 = vmax.f32 %v1333_v3, 0.0  ;;  %v3653_v24 = vrot.slane %v1382_v2, %v1386_v45  ;;  %v3655_v12 = vrot.slane %v1382_v2, %v1390_v14 }
 0x1a5   : > { %v1317_v16 = vadd.f32 %v1301_v54, %v1216_v33  ;;  %v1348_v29 = vmax.f32 %v1332_v63, 0.0 }
 0x1a6   : > { %v1341_v37 = vadd.f32 %v3036_v7, %v1318_v30 }
 0x1a7   : > { %v1340_v8 = vadd.f32 %v3036_v7, %v1317_v16  ;;  %v1361_v55 = vpack.c.bf16 %v1349_v28, %v1348_v29 }
 0x1a8   : > { %v1357_v31 = vmax.f32 %v1341_v37, 0.0 }
 0x1a9   : > { %1537 = vmatmul.mubr.bf16.gmra.mrb[12].mxu0 %v1361_v55  ;;  %v1356_v50 = vmax.f32 %v1340_v8, 0.0 }
 0x1ab   : > { %v1365_v43 = vpack.c.bf16 %v1357_v31, %v1356_v50 }
 0x1ad   : > { %1577 = vmatmul.mubr.bf16.gmra.mrb[12].mxu1 %v1365_v43 }
 0x203   : > { %v1508_v7 = vpop.f32.mrb[0].mxu0 }
 0x204   : > { %v1509_v58 = vadd.f32 %v1508_v7, %v3653_v24  ;;  %v1510_v52 = vpop.f32.mrb[1].mxu0 }
 0x205   : > { %v1511_v32 = vadd.f32 %v1510_v52, %v3655_v12  ;;  %v1512_v62 = vpop.f32.mrb[2].mxu0 }
 0x206   : > { %v1587_v34 = vmax.f32 %v1509_v58, 0.0  ;;  %v1513_v5 = vadd.f32 %v1512_v62, %v3653_v24  ;;  %v1514_v9 = vpop.f32.mrb[3].mxu0 }
 0x207   : > { %v1588_v6 = vmax.f32 %v1511_v32, 0.0  ;;  %v1515_v10 = vadd.f32 %v1514_v9, %v3655_v12  ;;  %v1548_v1 = vpop.f32.mrb[0].mxu1 }
 0x208   : > { %1619 = vst [vmem:[%s3662_s13] sm:$0xff] %v1587_v34  ;;  %v1589_v15 = vmax.f32 %v1513_v5, 0.0  ;;  %v1549_v17 = vadd.f32 %v1548_v1, %v3653_v24  ;;  %v1550_v36 = vpop.f32.mrb[1].mxu1 }
 0x209   : > { %1620 = vst [vmem:[%s3662_s13 + $0x8] sm:$0xff] %v1588_v6  ;;  %v1590_v56 = vmax.f32 %v1515_v10, 0.0  ;;  %v1551_v49 = vadd.f32 %v1550_v36, %v3655_v12  ;;  %v1552_v4 = vpop.f32.mrb[2].mxu1 }
 0x20a   : > { %1621 = vst [vmem:[%s3662_s13 + $0x10] sm:$0xff] %v1589_v15  ;;  %v1603_v35 = vmax.f32 %v1549_v17, 0.0  ;;  %v1553_v61 = vadd.f32 %v1552_v4, %v3653_v24  ;;  %v1554_v47 = vpop.f32.mrb[3].mxu1 }
 0x20b   : > { %1622 = vst [vmem:[%s3662_s13 + $0x18] sm:$0xff] %v1590_v56  ;;  %v1604_v39 = vmax.f32 %v1551_v49, 0.0  ;;  %v1555_v60 = vadd.f32 %v1554_v47, %v3655_v12 }
 0x20c   : > { %1635 = vst [vmem:[%s3662_s13 + $0x80] sm:$0xff] %v1603_v35  ;;  %v1605_v48 = vmax.f32 %v1553_v61, 0.0 }
 0x20d   : > { %1636 = vst [vmem:[%s3662_s13 + $0x88] sm:$0xff] %v1604_v39  ;;  %v1606_v22 = vmax.f32 %v1555_v60, 0.0 }
 0x20e   : > { %1637 = vst [vmem:[%s3662_s13 + $0x90] sm:$0xff] %v1605_v48 }
 0x20f   : > { %1638 = vst [vmem:[%s3662_s13 + $0x98] sm:$0xff] %v1606_v22 }
 0x233   : > { %v1518_v53 = vpop.f32.mrb[4].mxu0 }
 0x234   : > { %v1519_v18 = vadd.f32 %v1518_v53, %v3653_v24  ;;  %v1520_v38 = vpop.f32.mrb[5].mxu0 }
 0x235   : > { %v1521_v0 = vadd.f32 %v1520_v38, %v3655_v12  ;;  %v1522_v59 = vpop.f32.mrb[6].mxu0 }
 0x236   : > { %v1591_v51 = vmax.f32 %v1519_v18, 0.0  ;;  %v1523_v27 = vadd.f32 %v1522_v59, %v3653_v24  ;;  %v1524_v19 = vpop.f32.mrb[7].mxu0 }
 0x237   : > { %v1592_v41 = vmax.f32 %v1521_v0, 0.0  ;;  %v1525_v21 = vadd.f32 %v1524_v19, %v3655_v12  ;;  %v1558_v26 = vpop.f32.mrb[4].mxu1 }
 0x238   : > { %1623 = vst [vmem:[%s3662_s13 + $0x20] sm:$0xff] %v1591_v51  ;;  %v1593_v23 = vmax.f32 %v1523_v27, 0.0  ;;  %v1559_v11 = vadd.f32 %v1558_v26, %v3653_v24  ;;  %v1560_v20 = vpop.f32.mrb[5].mxu1 }
 0x239   : > { %1624 = vst [vmem:[%s3662_s13 + $0x28] sm:$0xff] %v1592_v41  ;;  %v1594_v25 = vmax.f32 %v1525_v21, 0.0  ;;  %v1561_v46 = vadd.f32 %v1560_v20, %v3655_v12  ;;  %v1562_v44 = vpop.f32.mrb[6].mxu1 }
 0x23a   : > { %1625 = vst [vmem:[%s3662_s13 + $0x30] sm:$0xff] %v1593_v23  ;;  %v1607_v40 = vmax.f32 %v1559_v11, 0.0  ;;  %v1563_v3 = vadd.f32 %v1562_v44, %v3653_v24  ;;  %v1564_v57 = vpop.f32.mrb[7].mxu1 }
 0x23b   : > { %1626 = vst [vmem:[%s3662_s13 + $0x38] sm:$0xff] %v1594_v25  ;;  %v1608_v42 = vmax.f32 %v1561_v46, 0.0  ;;  %v1565_v13 = vadd.f32 %v1564_v57, %v3655_v12 }
 0x23c   : > { %1639 = vst [vmem:[%s3662_s13 + $0xa0] sm:$0xff] %v1607_v40  ;;  %v1609_v63 = vmax.f32 %v1563_v3, 0.0 }
 0x23d   : > { %1640 = vst [vmem:[%s3662_s13 + $0xa8] sm:$0xff] %v1608_v42  ;;  %v1610_v33 = vmax.f32 %v1565_v13, 0.0 }
 0x23e   : > { %1641 = vst [vmem:[%s3662_s13 + $0xb0] sm:$0xff] %v1609_v63 }
 0x23f   : > { %1642 = vst [vmem:[%s3662_s13 + $0xb8] sm:$0xff] %v1610_v33 }
 0x263   : > { %v1528_v54 = vpop.f32.mrb[8].mxu0 }
 0x264   : > { %v1529_v30 = vadd.f32 %v1528_v54, %v3653_v24  ;;  %v1530_v28 = vpop.f32.mrb[9].mxu0 }
 0x265   : > { %v1531_v16 = vadd.f32 %v1530_v28, %v3655_v12  ;;  %v1532_v29 = vpop.f32.mrb[10].mxu0 }
 0x266   : > { %v1595_v37 = vmax.f32 %v1529_v30, 0.0  ;;  %v1533_v8 = vadd.f32 %v1532_v29, %v3653_v24  ;;  %v1534_v55 = vpop.f32.mrb[11].mxu0 }
 0x267   : > { %v1596_v31 = vmax.f32 %v1531_v16, 0.0  ;;  %v1535_v50 = vadd.f32 %v1534_v55, %v3655_v12  ;;  %v1568_v43 = vpop.f32.mrb[8].mxu1 }
 0x268   : > { %1627 = vst [vmem:[%s3662_s13 + $0x40] sm:$0xff] %v1595_v37  ;;  %v1597_v45 = vmax.f32 %v1533_v8, 0.0  ;;  %v1569_v2 = vadd.f32 %v1568_v43, %v3653_v24  ;;  %v1570_v14 = vpop.f32.mrb[9].mxu1 }
 0x269   : > { %1628 = vst [vmem:[%s3662_s13 + $0x48] sm:$0xff] %v1596_v31  ;;  %v1598_v7 = vmax.f32 %v1535_v50, 0.0  ;;  %v1571_v58 = vadd.f32 %v1570_v14, %v3655_v12  ;;  %v1572_v52 = vpop.f32.mrb[10].mxu1 }
 0x26a   : > { %1629 = vst [vmem:[%s3662_s13 + $0x50] sm:$0xff] %v1597_v45  ;;  %v1611_v32 = vmax.f32 %v1569_v2, 0.0  ;;  %v1573_v62 = vadd.f32 %v1572_v52, %v3653_v24  ;;  %v1574_v34 = vpop.f32.mrb[11].mxu1 }
 0x26b   : > { %1630 = vst [vmem:[%s3662_s13 + $0x58] sm:$0xff] %v1598_v7  ;;  %v1612_v5 = vmax.f32 %v1571_v58, 0.0  ;;  %v1575_v9 = vadd.f32 %v1574_v34, %v3655_v12 }
 0x26c   : > { %1643 = vst [vmem:[%s3662_s13 + $0xc0] sm:$0xff] %v1611_v32  ;;  %v1613_v6 = vmax.f32 %v1573_v62, 0.0 }
 0x26d   : > { %1644 = vst [vmem:[%s3662_s13 + $0xc8] sm:$0xff] %v1612_v5  ;;  %v1614_v10 = vmax.f32 %v1575_v9, 0.0 }
 0x26e   : > { %1645 = vst [vmem:[%s3662_s13 + $0xd0] sm:$0xff] %v1613_v6 }
 0x26f   : > { %1646 = vst [vmem:[%s3662_s13 + $0xd8] sm:$0xff] %v1614_v10 }
 0x27c   : > { %v1538_v1 = vpop.f32.mrb[12].mxu0 }
 0x27d   : > { %v1539_v15 = vadd.f32 %v1538_v1, %v3653_v24  ;;  %v1540_v17 = vpop.f32.mrb[13].mxu0 }
 0x27e   : > { %v1541_v36 = vadd.f32 %v1540_v17, %v3655_v12  ;;  %v1542_v56 = vpop.f32.mrb[14].mxu0 }
 0x27f   : > { %v1599_v49 = vmax.f32 %v1539_v15, 0.0  ;;  %v1543_v4 = vadd.f32 %v1542_v56, %v3653_v24  ;;  %v1544_v35 = vpop.f32.mrb[15].mxu0 }
 0x280   : > { %v1600_v61 = vmax.f32 %v1541_v36, 0.0  ;;  %v1545_v47 = vadd.f32 %v1544_v35, %v3655_v12  ;;  %v1578_v39 = vpop.f32.mrb[12].mxu1 }
 0x281   : > { %1631 = vst [vmem:[%s3662_s13 + $0x60] sm:$0xff] %v1599_v49  ;;  %v1601_v60 = vmax.f32 %v1543_v4, 0.0  ;;  %v1579_v48 = vadd.f32 %v1578_v39, %v3653_v24  ;;  %v1580_v22 = vpop.f32.mrb[13].mxu1 }
 0x282   : > { %1632 = vst [vmem:[%s3662_s13 + $0x68] sm:$0xff] %v1600_v61  ;;  %v1602_v53 = vmax.f32 %v1545_v47, 0.0  ;;  %v1581_v18 = vadd.f32 %v1580_v22, %v3655_v12  ;;  %v1582_v38 = vpop.f32.mrb[14].mxu1 }
 0x283   : > { %1633 = vst [vmem:[%s3662_s13 + $0x70] sm:$0xff] %v1601_v60  ;;  %v1615_v0 = vmax.f32 %v1579_v48, 0.0  ;;  %v1583_v59 = vadd.f32 %v1582_v38, %v3653_v24  ;;  %v1584_v51 = vpop.f32.mrb[15].mxu1 }
 0x284   : > { %1634 = vst [vmem:[%s3662_s13 + $0x78] sm:$0xff] %v1602_v53  ;;  %v1616_v27 = vmax.f32 %v1581_v18, 0.0  ;;  %v1585_v19 = vadd.f32 %v1584_v51, %v3655_v12 }
 0x285   : > { %1647 = vst [vmem:[%s3662_s13 + $0xe0] sm:$0xff] %v1615_v0  ;;  %v1617_v41 = vmax.f32 %v1583_v59, 0.0 }
 0x286   : > { %1648 = vst [vmem:[%s3662_s13 + $0xe8] sm:$0xff] %v1616_v27  ;;  %v1618_v24 = vmax.f32 %v1585_v19, 0.0 }
 0x287   : > { %1649 = vst [vmem:[%s3662_s13 + $0xf0] sm:$0xff] %v1617_v41 }
 0x288   : > { %1650 = vst [vmem:[%s3662_s13 + $0xf8] sm:$0xff] %v1618_v24 }
 0x289   : > { %2029 = shalt.err (!%p2026_p1)
}
 0x28a   : > { %s2030_s15 = scalar_lea.hbm %s3726_s6, 4096  ;;  %s2034_s28 = scalar_lea.hbm %s3780_s5, 8192 }
 0x28b   : > { %p2031_p13 = scmp.ne.s32.totalorder %s3726_s6, %s2030_s15  ;;  %p2035_p4 = scmp.lt.u32.totalorder %s3726_s6, %s3780_s5 }
 0x28c   : > { %p2036_p5 = scmp.lt.u32.totalorder %s2034_s28, %s2030_s15  ;;  %p2038_p11 = scmp.lt.u32.totalorder %s2030_s15, %s3726_s6 }
 0x28d   : > { %p2032_p6 = pnand %p2031_p13, %p3915_p0 }
 0x28e   : > { %p2037_p8 = por %p2036_p5, %p2035_p4 }
 0x28f   : > { %p2033_p10 = pneg %p2032_p6 }
 0x290   : > { %p2039_p2 = por %p2038_p11, %p2037_p8 }
 0x292   : > { %p2040_p3 = pnand %p2039_p2, %p2033_p10 }
 0x294   : > { %2043 = shalt.err (!%p2040_p3)
}
 0x295   : > { %s2097_s30 = smov 256   ;;  %s2098_s17 = smov 16  }
 0x296   : > { %1832 = dma.vmem_to_hbm [thread:$0]  (%p3915_p0), %s3728_s11, 4096, %s3726_s6, %s1652_s22, %s2097_s30, %s2097_s30, %s2098_s17  }
 0x297 PF: > { %s1681_s7 = sand.u32 1, %s2074_s18   ;;  %p3916_p7 = scmp.ne.s32.totalorder %s3805_s25, 0 }
 0x298   : > { %p3917_p9 = scmp.ge.s32.totalorder %s2086_s21, 2  ;;  %s1682_s8 = scalar_lea.sflag [#allocation4], %s1681_s7 }
 0x29a   : > { %p1846_p12 = pnand %p3917_p9, %p3916_p7 }
 0x29c   : > { %2069 = dma.done.wait (!%p1846_p12), %s1682_s8, 4096  }
 0x29d   : > { %2071 = vsyncadd (!%p1846_p12), %s1682_s8, 4294963200  ;;  %p19_p1 = scmp.ge.s32.totalorder %s2245_s29, 4   ;;  %s3918_s18 = smov %s2078_s19 }
 0x29e   : > { %s3919_s19 = smov %s2082_s20  ;;  %s3920_s20 = smov %s2261_s27 }
 0x29f   : > { %s3921_s21 = smov %s2245_s29  ;;  %21 = sbr.rel (!%p19_p1) target bundleno = 6 (0x6), region = 93 }
 0x2a6   :  { %1687 = vsyncpa [#allocation3], 1 }
 0x2a7   :  { %1689 = vsyncpa [#allocation3 + $0x1], 1 }
 0x2a8   :  { %1690 = vsyncpa [#allocation6], 1 }
 0x2a9   :  { %1691 = vsyncpa [#allocation4], 1 }
 0x2aa   :  { %1693 = vsyncpa [#allocation4 + $0x1], 1 }

</bundles_post_ra>
